<compile_context>
chip_gen: v7x
topology: tpu7x:2x2x1
jax: 0.10.0
libtpu: 0.0.40
codegen_flags: <defaults>
</compile_context>

<pallas_src>
import jax
import jax.numpy as jnp
from jax.experimental import pallas as pl
from jax.experimental.pallas import tpu as pltpu

KH = KW = 4          # Critic kernel_size = 4
NEG_SLOPE = 0.2      # LeakyReLU slope
IN_EPS = 1e-5        # nn.InstanceNorm2d default eps
VMEM_LIMIT = 32 * 1024 * 1024


def _compiler_params(dims):
    return pltpu.CompilerParams(dimension_semantics=dims,
                                vmem_limit_bytes=VMEM_LIMIT)


def _leaky(y):
    # LeakyReLU(0.2): for slope in (0,1), max(y, slope*y) == leaky_relu(y).
    return jnp.maximum(y, NEG_SLOPE * y)


# ---------------------------------------------------------------------------
# Kernels
# ---------------------------------------------------------------------------
def _make_conv_bias_kernel(apply_act):
    """(Cout,K)@(K,tm) MXU matmul fused with conv-bias [+ LeakyReLU(0.2)]."""
    def kernel(p_ref, w_ref, b_ref, o_ref):
        acc = jnp.dot(w_ref[...], p_ref[...],
                      preferred_element_type=jnp.float32)       # (Cout, tm) f32
        y = acc + b_ref[...]
        if apply_act:
            y = _leaky(y)
        o_ref[...] = y.astype(o_ref.dtype)
    return kernel


def _conv_in_act_kernel(p_ref, w_ref, g_ref, bt_ref, o_ref):
    """(Cout,K)@(K,M) matmul fused with InstanceNorm2d(affine) + LeakyReLU(0.2).

    One block holds one sample's full spatial extent, so the per-(sample,
    channel) mean/var over the lane axis are exact InstanceNorm statistics.
    """
    acc = jnp.dot(w_ref[...], p_ref[...],
                  preferred_element_type=jnp.float32)            # (Cout, M) f32
    mean = jnp.mean(acc, axis=-1, keepdims=True)
    cen = acc - mean
    var = jnp.mean(cen * cen, axis=-1, keepdims=True)            # biased, like PyTorch
    scale = jax.lax.rsqrt(var + IN_EPS) * g_ref[...]             # fold on (C,1) column
    y = cen * scale + bt_ref[...]
    o_ref[...] = _leaky(y).astype(o_ref.dtype)


def _fused_tail_kernel(p_ref, w4_ref, g_ref, bt_ref, w5_ref, b5_ref, o_ref):
    """Block-4 (conv + IN + LeakyReLU) fused with the final Conv(8f->1,k4,s2,p0).

    Used when block-4's output map is 4x4: the final conv's receptive field is
    the whole map, so the 1-channel conv reduces to a VPU dot-reduction (no
    width-1 MXU pass, no lane-sparse intermediate stores).
    """
    acc = jnp.dot(w4_ref[...], p_ref[...],
                  preferred_element_type=jnp.float32)            # (C4, 16) f32
    mean = jnp.mean(acc, axis=-1, keepdims=True)
    cen = acc - mean
    var = jnp.mean(cen * cen, axis=-1, keepdims=True)
    scale = jax.lax.rsqrt(var + IN_EPS) * g_ref[...]
    a = _leaky(cen * scale + bt_ref[...])                        # (C4, 16) f32
    row = jnp.sum(a * w5_ref[...], axis=1, keepdims=True)        # (C4, 1) lane reduce
    out = jnp.sum(row, axis=0, keepdims=True) + b5_ref[...]      # (1, 1)  sublane reduce
    o_ref[...] = out.astype(o_ref.dtype)


# ---------------------------------------------------------------------------
# Layer wrappers
# ---------------------------------------------------------------------------
def _patches(x_nchw, stride, pad):
    """im2col: (N, Cin*KH*KW, Ho*Wo); feature index = cin*16 + kh*4 + kw."""
    n = x_nchw.shape[0]
    p = jax.lax.conv_general_dilated_patches(
        x_nchw, (KH, KW), (stride, stride),
        [(pad, pad), (pad, pad)])                                # (N, K, Ho, Wo)
    _, k, ho, wo = p.shape
    return p.reshape(n, k, ho * wo), ho, wo


def _conv_layer(x_nchw, w2d, *, shift, scale=None, stride, pad, act=True,
                m_tile=512, out_dtype=jnp.bfloat16):
    """One Conv2d(k=4) layer fused with bias+LeakyReLU (scale is None) or
    InstanceNorm(affine)+LeakyReLU (scale=gamma, shift=beta).

    x_nchw: (N, Cin, H, W) bf16    w2d: (Cout, Cin*16) bf16    shift/scale: (Cout,)
    Returns (N, Cout, Ho, Wo) in out_dtype.
    """
    N = x_nchw.shape[0]
    Cout, K = w2d.shape
    patches, Ho, Wo = _patches(x_nchw, stride, pad)
    M = Ho * Wo

    if scale is not None:
        # InstanceNorm layer: keep one sample's full spatial extent per block so
        # the in-kernel stats are exact; grid pipelines / megacore-shards over N.
        # TODO(synk): for very large Ho*Wo, tile M with scratch-accumulated
        # two-pass mean/var instead of one per-sample block.
        grid = (N,)
        dims = ("parallel",)
        in_specs = [
            pl.BlockSpec((None, K, M), lambda n: (n, 0, 0)),
            pl.BlockSpec((Cout, K), lambda n: (0, 0)),
            pl.BlockSpec((Cout, 1), lambda n: (0, 0)),
            pl.BlockSpec((Cout, 1), lambda n: (0, 0)),
        ]
        out_spec = pl.BlockSpec((None, Cout, M), lambda n: (n, 0, 0))
        kernel = _conv_in_act_kernel
        args = (patches, w2d, scale.reshape(Cout, 1), shift.reshape(Cout, 1))
    else:
        # Bias layer (no cross-position reduction): additionally tile the
        # spatial dim so HBM loads pipeline against MXU work on large images.
        tm = m_tile if (M > m_tile and M % m_tile == 0) else M
        grid = (N, M // tm)
        dims = ("parallel", "parallel")
        in_specs = [
            pl.BlockSpec((None, K, tm), lambda n, m: (n, 0, m)),
            pl.BlockSpec((Cout, K), lambda n, m: (0, 0)),
            pl.BlockSpec((Cout, 1), lambda n, m: (0, 0)),
        ]
        out_spec = pl.BlockSpec((None, Cout, tm), lambda n, m: (n, 0, m))
        kernel = _make_conv_bias_kernel(act)
        args = (patches, w2d, shift.reshape(Cout, 1))

    out = pl.pallas_call(
        kernel,
        out_shape=jax.ShapeDtypeStruct((N, Cout, M), out_dtype),
        grid=grid,
        in_specs=in_specs,
        out_specs=out_spec,
        compiler_params=_compiler_params(dims),
    )(*args)
    return out.reshape(N, Cout, Ho, Wo)


def _fused_tail(x_nchw, w4_2d, gamma4, beta4, w5_cs, b5):
    """Block-4 + final conv fused. x_nchw: (N, 4f, 8, 8) bf16. Returns (N, 1, 1) f32."""
    N = x_nchw.shape[0]
    C4, K4 = w4_2d.shape
    patches, Ho, Wo = _patches(x_nchw, 2, 1)          # Ho = Wo = 4
    S = Ho * Wo                                       # 16
    return pl.pallas_call(
        _fused_tail_kernel,
        out_shape=jax.ShapeDtypeStruct((N, 1, 1), jnp.float32),
        grid=(N,),
        in_specs=[
            pl.BlockSpec((None, K4, S), lambda n: (n, 0, 0)),
            pl.BlockSpec((C4, K4), lambda n: (0, 0)),
            pl.BlockSpec((C4, 1), lambda n: (0, 0)),
            pl.BlockSpec((C4, 1), lambda n: (0, 0)),
            pl.BlockSpec((C4, S), lambda n: (0, 0)),
            pl.BlockSpec((1, 1), lambda n: (0, 0)),
        ],
        out_specs=pl.BlockSpec((None, 1, 1), lambda n: (n, 0, 0)),
        compiler_params=_compiler_params(("parallel",)),
    )(patches, w4_2d, gamma4.reshape(C4, 1), beta4.reshape(C4, 1),
      w5_cs, b5.reshape(1, 1))


# ---------------------------------------------------------------------------
# Parameters & forward
# ---------------------------------------------------------------------------
def init_critic_params(key, channels_img, features_d, conditional=False,
                       d_conditional=9, image_size=64):
    """Synthetic parameters matching Critic.__init__ shapes.

    Conv weights are stored pre-flattened as (Cout, Cin*KH*KW) with feature
    ordering cin*16 + kh*4 + kw (matches conv_general_dilated_patches)."""
    f = features_d
    ks = iter(jax.random.split(key, 16))

    def conv_w(cout, cin):
        fan_in = cin * KH * KW
        w = jax.random.normal(next(ks), (cout, cin, KH, KW), jnp.float32)
        return (w * fan_in ** -0.5).reshape(cout, fan_in)

    params = {
        "l1": {"w": conv_w(f, channels_img).astype(jnp.bfloat16),
               "b": 0.01 * jax.random.normal(next(ks), (f,), jnp.float32)},
    }
    cin = f
    for i, cout in zip((2, 3, 4), (2 * f, 4 * f, 8 * f)):
        params[f"l{i}"] = {
            "w": conv_w(cout, cin).astype(jnp.bfloat16),
            "g": 1.0 + 0.1 * jax.random.normal(next(ks), (cout,), jnp.float32),
            "beta": 0.01 * jax.random.normal(next(ks), (cout,), jnp.float32),
        }
        cin = cout
    params["l5"] = {"w": conv_w(1, 8 * f),   # kept f32: used as a VPU reduction weight
                    "b": 0.01 * jax.random.normal(next(ks), (1,), jnp.float32)}
    if conditional:
        params["embed_w"] = (d_conditional ** -0.5) * jax.random.normal(
            next(ks), (d_conditional, image_size * image_size), jnp.float32)
    return params


def critic_forward(params, x, y=None):
    """Critic.forward(x, y).  x: (N, channels_img, S, S) NCHW."""
    if y is not None:
        # nn.Linear(d_conditional, S*S, bias=False) embed -> extra input channel.
        # Tiny GEMV, left to plain XLA rather than a dedicated Pallas kernel.
        S = x.shape[-1]
        emb = jnp.dot(y, params["embed_w"]).reshape(-1, 1, S, S)
        x = jnp.concatenate([x, emb], axis=1)
    x = x.astype(jnp.bfloat16)   # single cast; everything downstream stays bf16

    l1 = params["l1"]
    h = _conv_layer(x, l1["w"], shift=l1["b"], stride=2, pad=1, act=True)
    for name in ("l2", "l3"):
        lp = params[name]
        h = _conv_layer(h, lp["w"], scale=lp["g"], shift=lp["beta"],
                        stride=2, pad=1)

    l4, l5 = params["l4"], params["l5"]
    if h.shape[-2] == 8 and h.shape[-1] == 8:
        # Block-4 output is 4x4 = exactly the final conv's receptive field:
        # fuse block-4 and the final Cout=1 conv into a single kernel.
        out = _fused_tail(h, l4["w"], l4["g"], l4["beta"],
                          l5["w"].reshape(-1, KH * KW), l5["b"])
        return out.reshape(h.shape[0], 1, 1, 1)

    # General image_size fallback: unfused block-4 + final conv (k4, s2, p0).
    h = _conv_layer(h, l4["w"], scale=l4["g"], shift=l4["beta"], stride=2, pad=1)
    h = _conv_layer(h, l5["w"].astype(jnp.bfloat16), shift=l5["b"],
                    stride=2, pad=0, act=False, out_dtype=jnp.float32)
    return h


if __name__ == "__main__":
    key = jax.random.PRNGKey(0)
    kx, kp = jax.random.split(key)

    batch, channels_img, image_size, features_d = 2, 4, 64, 8
    x = jax.random.normal(kx, (batch, channels_img, image_size, image_size),
                          jnp.float32)
    params = init_critic_params(kp, channels_img, features_d)

    fwd = jax.jit(critic_forward)
    out = jax.block_until_ready(fwd(params, x))

    # 64 -s2-> 32 -s2-> 16 -s2-> 8 -s2-> 4 -(k4,s2,p0)-> 1  => (N, 1, 1, 1)
    assert out.shape == (batch, 1, 1, 1), out.shape
    assert out.dtype == jnp.float32, out.dtype
    assert bool(jnp.all(jnp.isfinite(out)))
    print("KERNEL_OK")
</pallas_src>

<mosaic_0001>
module attributes {stable_mosaic.version = 11 : i64} {
  func.func @kernel(%arg0: i32, %arg1: i32, %arg2: memref<1x64x512xbf16, #tpu.memory_space<vmem>>, %arg3: memref<8x64xbf16, #tpu.memory_space<vmem>>, %arg4: memref<8x1xf32, #tpu.memory_space<vmem>>, %arg5: memref<1x8x512xbf16, #tpu.memory_space<vmem>>) attributes {dimension_semantics = [#tpu.dimension_semantics<parallel>, #tpu.dimension_semantics<parallel>], iteration_bounds = array<i64: 2, 2>, scalar_prefetch = 0 : i64, scratch_operands = 0 : i64, tpu.core_type = #tpu.core_type<tc>, window_params = [{transform_indices = @transform_0, window_bounds = array<i64: 1, 64, 512>}, {pipeline_mode = #tpu.pipeline_mode<synchronous>, transform_indices = @transform_1, window_bounds = array<i64: 8, 64>}, {pipeline_mode = #tpu.pipeline_mode<synchronous>, transform_indices = @transform_2, window_bounds = array<i64: 8, 1>}, {transform_indices = @transform_3, window_bounds = array<i64: 1, 8, 512>}]} {
    %c0 = arith.constant 0 : index
    %c0_0 = arith.constant 0 : index
    %0 = vector.load %arg3[%c0, %c0_0] : memref<8x64xbf16, #tpu.memory_space<vmem>>, vector<8x64xbf16>
    %c0_1 = arith.constant 0 : index
    %c0_2 = arith.constant 0 : index
    %c0_3 = arith.constant 0 : index
    %1 = vector.load %arg2[%c0_1, %c0_2, %c0_3] : memref<1x64x512xbf16, #tpu.memory_space<vmem>>, vector<1x64x512xbf16>
    %2 = vector.shape_cast %1 : vector<1x64x512xbf16> to vector<64x512xbf16>
    %cst = arith.constant dense<0.000000e+00> : vector<8x512xf32>
    %3 = tpu.matmul %0, %2, %cst {dimension_numbers = #tpu.dot_dimension_numbers<[1], [0], [0], [1], [0, 0, 1, 1], [], []>} : vector<8x64xbf16>, vector<64x512xbf16>, vector<8x512xf32> -> vector<8x512xf32>
    %c0_4 = arith.constant 0 : index
    %c0_5 = arith.constant 0 : index
    %4 = vector.load %arg4[%c0_4, %c0_5] : memref<8x1xf32, #tpu.memory_space<vmem>>, vector<8x1xf32>
    %5 = vector.broadcast %4 : vector<8x1xf32> to vector<8x512xf32>
    %6 = arith.addf %3, %5 : vector<8x512xf32>
    %cst_6 = arith.constant 2.000000e-01 : f32
    %7 = vector.broadcast %cst_6 : f32 to vector<8x512xf32>
    %8 = arith.mulf %7, %6 : vector<8x512xf32>
    %9 = arith.maximumf %6, %8 : vector<8x512xf32>
    %10 = arith.truncf %9 : vector<8x512xf32> to vector<8x512xbf16>
    %c0_7 = arith.constant 0 : index
    %c0_8 = arith.constant 0 : index
    %c0_9 = arith.constant 0 : index
    %11 = vector.load %arg5[%c0_7, %c0_8, %c0_9] : memref<1x8x512xbf16, #tpu.memory_space<vmem>>, vector<1x8x512xbf16>
    %12 = vector.shape_cast %11 : vector<1x8x512xbf16> to vector<8x512xbf16>
    %13 = vector.shape_cast %10 : vector<8x512xbf16> to vector<1x8x512xbf16>
    tpu.vector_store %arg5[%c0_7, %c0_8, %c0_9], %13 {strides = array<i32>} : memref<1x8x512xbf16, #tpu.memory_space<vmem>>, vector<1x8x512xbf16>,
    return
  }
  func.func @transform_0(%arg0: i32, %arg1: i32) -> (i32, i32, i32) {
    %c0_i32 = arith.constant 0 : i32
    %c0_i32_0 = arith.constant 0 : i32
    return %arg0, %c0_i32, %arg1 : i32, i32, i32
  }
  func.func @transform_1(%arg0: i32, %arg1: i32) -> (i32, i32) {
    %c0_i32 = arith.constant 0 : i32
    %c0_i32_0 = arith.constant 0 : i32
    %c0_i32_1 = arith.constant 0 : i32
    return %c0_i32, %c0_i32_0 : i32, i32
  }
  func.func @transform_2(%arg0: i32, %arg1: i32) -> (i32, i32) {
    %c0_i32 = arith.constant 0 : i32
    %c0_i32_0 = arith.constant 0 : i32
    %c0_i32_1 = arith.constant 0 : i32
    return %c0_i32, %c0_i32_0 : i32, i32
  }
  func.func @transform_3(%arg0: i32, %arg1: i32) -> (i32, i32, i32) {
    %c0_i32 = arith.constant 0 : i32
    %c0_i32_0 = arith.constant 0 : i32
    return %arg0, %c0_i32, %arg1 : i32, i32, i32
  }
}

module attributes {stable_mosaic.version = 11 : i64} {
  func.func @_conv_in_act_kernel(%arg0: i32, %arg1: memref<1x128x256xbf16, #tpu.memory_space<vmem>>, %arg2: memref<16x128xbf16, #tpu.memory_space<vmem>>, %arg3: memref<16x1xf32, #tpu.memory_space<vmem>>, %arg4: memref<16x1xf32, #tpu.memory_space<vmem>>, %arg5: memref<1x16x256xbf16, #tpu.memory_space<vmem>>) attributes {dimension_semantics = [#tpu.dimension_semantics<parallel>], iteration_bounds = array<i64: 2>, scalar_prefetch = 0 : i64, scratch_operands = 0 : i64, tpu.core_type = #tpu.core_type<tc>, window_params = [{transform_indices = @transform_0, window_bounds = array<i64: 1, 128, 256>}, {pipeline_mode = #tpu.pipeline_mode<synchronous>, transform_indices = @transform_1, window_bounds = array<i64: 16, 128>}, {pipeline_mode = #tpu.pipeline_mode<synchronous>, transform_indices = @transform_2, window_bounds = array<i64: 16, 1>}, {pipeline_mode = #tpu.pipeline_mode<synchronous>, transform_indices = @transform_3, window_bounds = array<i64: 16, 1>}, {transform_indices = @transform_4, window_bounds = array<i64: 1, 16, 256>}]} {
    %c0 = arith.constant 0 : index
    %c0_0 = arith.constant 0 : index
    %0 = vector.load %arg2[%c0, %c0_0] : memref<16x128xbf16, #tpu.memory_space<vmem>>, vector<16x128xbf16>
    %c0_1 = arith.constant 0 : index
    %c0_2 = arith.constant 0 : index
    %c0_3 = arith.constant 0 : index
    %1 = vector.load %arg1[%c0_1, %c0_2, %c0_3] : memref<1x128x256xbf16, #tpu.memory_space<vmem>>, vector<1x128x256xbf16>
    %2 = vector.shape_cast %1 : vector<1x128x256xbf16> to vector<128x256xbf16>
    %cst = arith.constant dense<0.000000e+00> : vector<16x256xf32>
    %3 = tpu.matmul %0, %2, %cst {dimension_numbers = #tpu.dot_dimension_numbers<[1], [0], [0], [1], [0, 0, 1, 1], [], []>} : vector<16x128xbf16>, vector<128x256xbf16>, vector<16x256xf32> -> vector<16x256xf32>
    %cst_4 = arith.constant dense<0.000000e+00> : vector<16xf32>
    %4 = vector.multi_reduction <add>, %3, %cst_4 [1] : vector<16x256xf32> to vector<16xf32>
    %5 = vector.shape_cast %4 : vector<16xf32> to vector<16x1xf32>
    %cst_5 = arith.constant 2.560000e+02 : f32
    %6 = vector.broadcast %cst_5 : f32 to vector<16x1xf32>
    %7 = arith.divf %5, %6 : vector<16x1xf32>
    %8 = vector.broadcast %7 : vector<16x1xf32> to vector<16x256xf32>
    %9 = arith.subf %3, %8 : vector<16x256xf32>
    %10 = arith.mulf %9, %9 : vector<16x256xf32>
    %cst_6 = arith.constant dense<0.000000e+00> : vector<16xf32>
    %11 = vector.multi_reduction <add>, %10, %cst_6 [1] : vector<16x256xf32> to vector<16xf32>
    %12 = vector.shape_cast %11 : vector<16xf32> to vector<16x1xf32>
    %cst_7 = arith.constant 2.560000e+02 : f32
    %13 = vector.broadcast %cst_7 : f32 to vector<16x1xf32>
    %14 = arith.divf %12, %13 : vector<16x1xf32>
    %cst_8 = arith.constant 9.99999974E-6 : f32
    %15 = vector.broadcast %cst_8 : f32 to vector<16x1xf32>
    %16 = arith.addf %14, %15 : vector<16x1xf32>
    %17 = math.rsqrt %16 : vector<16x1xf32>
    %c0_9 = arith.constant 0 : index
    %c0_10 = arith.constant 0 : index
    %18 = vector.load %arg3[%c0_9, %c0_10] : memref<16x1xf32, #tpu.memory_space<vmem>>, vector<16x1xf32>
    %19 = arith.mulf %17, %18 : vector<16x1xf32>
    %20 = vector.broadcast %19 : vector<16x1xf32> to vector<16x256xf32>
    %21 = arith.mulf %9, %20 : vector<16x256xf32>
    %c0_11 = arith.constant 0 : index
    %c0_12 = arith.constant 0 : index
    %22 = vector.load %arg4[%c0_11, %c0_12] : memref<16x1xf32, #tpu.memory_space<vmem>>, vector<16x1xf32>
    %23 = vector.broadcast %22 : vector<16x1xf32> to vector<16x256xf32>
    %24 = arith.addf %21, %23 : vector<16x256xf32>
    %cst_13 = arith.constant 2.000000e-01 : f32
    %25 = vector.broadcast %cst_13 : f32 to vector<16x256xf32>
    %26 = arith.mulf %25, %24 : vector<16x256xf32>
    %27 = arith.maximumf %24, %26 : vector<16x256xf32>
    %28 = arith.truncf %27 : vector<16x256xf32> to vector<16x256xbf16>
    %c0_14 = arith.constant 0 : index
    %c0_15 = arith.constant 0 : index
    %c0_16 = arith.constant 0 : index
    %29 = vector.load %arg5[%c0_14, %c0_15, %c0_16] : memref<1x16x256xbf16, #tpu.memory_space<vmem>>, vector<1x16x256xbf16>
    %30 = vector.shape_cast %29 : vector<1x16x256xbf16> to vector<16x256xbf16>
    %31 = vector.shape_cast %28 : vector<16x256xbf16> to vector<1x16x256xbf16>
    tpu.vector_store %arg5[%c0_14, %c0_15, %c0_16], %31 {strides = array<i32>} : memref<1x16x256xbf16, #tpu.memory_space<vmem>>, vector<1x16x256xbf16>,
    return
  }
  func.func @transform_0(%arg0: i32) -> (i32, i32, i32) {
    %c0_i32 = arith.constant 0 : i32
    %c0_i32_0 = arith.constant 0 : i32
    %c0_i32_1 = arith.constant 0 : i32
    return %arg0, %c0_i32, %c0_i32_0 : i32, i32, i32
  }
  func.func @transform_1(%arg0: i32) -> (i32, i32) {
    %c0_i32 = arith.constant 0 : i32
    %c0_i32_0 = arith.constant 0 : i32
    %c0_i32_1 = arith.constant 0 : i32
    return %c0_i32, %c0_i32_0 : i32, i32
  }
  func.func @transform_2(%arg0: i32) -> (i32, i32) {
    %c0_i32 = arith.constant 0 : i32
    %c0_i32_0 = arith.constant 0 : i32
    %c0_i32_1 = arith.constant 0 : i32
    return %c0_i32, %c0_i32_0 : i32, i32
  }
  func.func @transform_3(%arg0: i32) -> (i32, i32) {
    %c0_i32 = arith.constant 0 : i32
    %c0_i32_0 = arith.constant 0 : i32
    %c0_i32_1 = arith.constant 0 : i32
    return %c0_i32, %c0_i32_0 : i32, i32
  }
  func.func @transform_4(%arg0: i32) -> (i32, i32, i32) {
    %c0_i32 = arith.constant 0 : i32
    %c0_i32_0 = arith.constant 0 : i32
    %c0_i32_1 = arith.constant 0 : i32
    return %arg0, %c0_i32, %c0_i32_0 : i32, i32, i32
  }
}

module attributes {stable_mosaic.version = 11 : i64} {
  func.func @_conv_in_act_kernel(%arg0: i32, %arg1: memref<1x256x64xbf16, #tpu.memory_space<vmem>>, %arg2: memref<32x256xbf16, #tpu.memory_space<vmem>>, %arg3: memref<32x1xf32, #tpu.memory_space<vmem>>, %arg4: memref<32x1xf32, #tpu.memory_space<vmem>>, %arg5: memref<1x32x64xbf16, #tpu.memory_space<vmem>>) attributes {dimension_semantics = [#tpu.dimension_semantics<parallel>], iteration_bounds = array<i64: 2>, scalar_prefetch = 0 : i64, scratch_operands = 0 : i64, tpu.core_type = #tpu.core_type<tc>, window_params = [{transform_indices = @transform_0, window_bounds = array<i64: 1, 256, 64>}, {pipeline_mode = #tpu.pipeline_mode<synchronous>, transform_indices = @transform_1, window_bounds = array<i64: 32, 256>}, {pipeline_mode = #tpu.pipeline_mode<synchronous>, transform_indices = @transform_2, window_bounds = array<i64: 32, 1>}, {pipeline_mode = #tpu.pipeline_mode<synchronous>, transform_indices = @transform_3, window_bounds = array<i64: 32, 1>}, {transform_indices = @transform_4, window_bounds = array<i64: 1, 32, 64>}]} {
    %c0 = arith.constant 0 : index
    %c0_0 = arith.constant 0 : index
    %0 = vector.load %arg2[%c0, %c0_0] : memref<32x256xbf16, #tpu.memory_space<vmem>>, vector<32x256xbf16>
    %c0_1 = arith.constant 0 : index
    %c0_2 = arith.constant 0 : index
    %c0_3 = arith.constant 0 : index
    %1 = vector.load %arg1[%c0_1, %c0_2, %c0_3] : memref<1x256x64xbf16, #tpu.memory_space<vmem>>, vector<1x256x64xbf16>
    %2 = vector.shape_cast %1 : vector<1x256x64xbf16> to vector<256x64xbf16>
    %cst = arith.constant dense<0.000000e+00> : vector<32x64xf32>
    %3 = tpu.matmul %0, %2, %cst {dimension_numbers = #tpu.dot_dimension_numbers<[1], [0], [0], [1], [0, 0, 1, 1], [], []>} : vector<32x256xbf16>, vector<256x64xbf16>, vector<32x64xf32> -> vector<32x64xf32>
    %cst_4 = arith.constant dense<0.000000e+00> : vector<32xf32>
    %4 = vector.multi_reduction <add>, %3, %cst_4 [1] : vector<32x64xf32> to vector<32xf32>
    %5 = vector.shape_cast %4 : vector<32xf32> to vector<32x1xf32>
    %cst_5 = arith.constant 6.400000e+01 : f32
    %6 = vector.broadcast %cst_5 : f32 to vector<32x1xf32>
    %7 = arith.divf %5, %6 : vector<32x1xf32>
    %8 = vector.broadcast %7 : vector<32x1xf32> to vector<32x64xf32>
    %9 = arith.subf %3, %8 : vector<32x64xf32>
    %10 = arith.mulf %9, %9 : vector<32x64xf32>
    %cst_6 = arith.constant dense<0.000000e+00> : vector<32xf32>
    %11 = vector.multi_reduction <add>, %10, %cst_6 [1] : vector<32x64xf32> to vector<32xf32>
    %12 = vector.shape_cast %11 : vector<32xf32> to vector<32x1xf32>
    %cst_7 = arith.constant 6.400000e+01 : f32
    %13 = vector.broadcast %cst_7 : f32 to vector<32x1xf32>
    %14 = arith.divf %12, %13 : vector<32x1xf32>
    %cst_8 = arith.constant 9.99999974E-6 : f32
    %15 = vector.broadcast %cst_8 : f32 to vector<32x1xf32>
    %16 = arith.addf %14, %15 : vector<32x1xf32>
    %17 = math.rsqrt %16 : vector<32x1xf32>
    %c0_9 = arith.constant 0 : index
    %c0_10 = arith.constant 0 : index
    %18 = vector.load %arg3[%c0_9, %c0_10] : memref<32x1xf32, #tpu.memory_space<vmem>>, vector<32x1xf32>
    %19 = arith.mulf %17, %18 : vector<32x1xf32>
    %20 = vector.broadcast %19 : vector<32x1xf32> to vector<32x64xf32>
    %21 = arith.mulf %9, %20 : vector<32x64xf32>
    %c0_11 = arith.constant 0 : index
    %c0_12 = arith.constant 0 : index
    %22 = vector.load %arg4[%c0_11, %c0_12] : memref<32x1xf32, #tpu.memory_space<vmem>>, vector<32x1xf32>
    %23 = vector.broadcast %22 : vector<32x1xf32> to vector<32x64xf32>
    %24 = arith.addf %21, %23 : vector<32x64xf32>
    %cst_13 = arith.constant 2.000000e-01 : f32
    %25 = vector.broadcast %cst_13 : f32 to vector<32x64xf32>
    %26 = arith.mulf %25, %24 : vector<32x64xf32>
    %27 = arith.maximumf %24, %26 : vector<32x64xf32>
    %28 = arith.truncf %27 : vector<32x64xf32> to vector<32x64xbf16>
    %c0_14 = arith.constant 0 : index
    %c0_15 = arith.constant 0 : index
    %c0_16 = arith.constant 0 : index
    %29 = vector.load %arg5[%c0_14, %c0_15, %c0_16] : memref<1x32x64xbf16, #tpu.memory_space<vmem>>, vector<1x32x64xbf16>
    %30 = vector.shape_cast %29 : vector<1x32x64xbf16> to vector<32x64xbf16>
    %31 = vector.shape_cast %28 : vector<32x64xbf16> to vector<1x32x64xbf16>
    tpu.vector_store %arg5[%c0_14, %c0_15, %c0_16], %31 {strides = array<i32>} : memref<1x32x64xbf16, #tpu.memory_space<vmem>>, vector<1x32x64xbf16>,
    return
  }
  func.func @transform_0(%arg0: i32) -> (i32, i32, i32) {
    %c0_i32 = arith.constant 0 : i32
    %c0_i32_0 = arith.constant 0 : i32
    %c0_i32_1 = arith.constant 0 : i32
    return %arg0, %c0_i32, %c0_i32_0 : i32, i32, i32
  }
  func.func @transform_1(%arg0: i32) -> (i32, i32) {
    %c0_i32 = arith.constant 0 : i32
    %c0_i32_0 = arith.constant 0 : i32
    %c0_i32_1 = arith.constant 0 : i32
    return %c0_i32, %c0_i32_0 : i32, i32
  }
  func.func @transform_2(%arg0: i32) -> (i32, i32) {
    %c0_i32 = arith.constant 0 : i32
    %c0_i32_0 = arith.constant 0 : i32
    %c0_i32_1 = arith.constant 0 : i32
    return %c0_i32, %c0_i32_0 : i32, i32
  }
  func.func @transform_3(%arg0: i32) -> (i32, i32) {
    %c0_i32 = arith.constant 0 : i32
    %c0_i32_0 = arith.constant 0 : i32
    %c0_i32_1 = arith.constant 0 : i32
    return %c0_i32, %c0_i32_0 : i32, i32
  }
  func.func @transform_4(%arg0: i32) -> (i32, i32, i32) {
    %c0_i32 = arith.constant 0 : i32
    %c0_i32_0 = arith.constant 0 : i32
    %c0_i32_1 = arith.constant 0 : i32
    return %arg0, %c0_i32, %c0_i32_0 : i32, i32, i32
  }
}

module attributes {stable_mosaic.version = 11 : i64} {
  func.func @_fused_tail_kernel(%arg0: i32, %arg1: memref<1x512x16xbf16, #tpu.memory_space<vmem>>, %arg2: memref<64x512xbf16, #tpu.memory_space<vmem>>, %arg3: memref<64x1xf32, #tpu.memory_space<vmem>>, %arg4: memref<64x1xf32, #tpu.memory_space<vmem>>, %arg5: memref<64x16xf32, #tpu.memory_space<vmem>>, %arg6: memref<1x1xf32, #tpu.memory_space<vmem>>, %arg7: memref<1x1x1xf32, #tpu.memory_space<vmem>>) attributes {dimension_semantics = [#tpu.dimension_semantics<parallel>], iteration_bounds = array<i64: 2>, scalar_prefetch = 0 : i64, scratch_operands = 0 : i64, tpu.core_type = #tpu.core_type<tc>, window_params = [{transform_indices = @transform_0, window_bounds = array<i64: 1, 512, 16>}, {pipeline_mode = #tpu.pipeline_mode<synchronous>, transform_indices = @transform_1, window_bounds = array<i64: 64, 512>}, {pipeline_mode = #tpu.pipeline_mode<synchronous>, transform_indices = @transform_2, window_bounds = array<i64: 64, 1>}, {pipeline_mode = #tpu.pipeline_mode<synchronous>, transform_indices = @transform_3, window_bounds = array<i64: 64, 1>}, {pipeline_mode = #tpu.pipeline_mode<synchronous>, transform_indices = @transform_4, window_bounds = array<i64: 64, 16>}, {pipeline_mode = #tpu.pipeline_mode<synchronous>, transform_indices = @transform_5, window_bounds = array<i64: 1, 1>}, {transform_indices = @transform_6, window_bounds = array<i64: 1, 1, 1>}]} {
    %c0 = arith.constant 0 : index
    %c0_0 = arith.constant 0 : index
    %0 = vector.load %arg2[%c0, %c0_0] : memref<64x512xbf16, #tpu.memory_space<vmem>>, vector<64x512xbf16>
    %c0_1 = arith.constant 0 : index
    %c0_2 = arith.constant 0 : index
    %c0_3 = arith.constant 0 : index
    %1 = vector.load %arg1[%c0_1, %c0_2, %c0_3] : memref<1x512x16xbf16, #tpu.memory_space<vmem>>, vector<1x512x16xbf16>
    %2 = vector.shape_cast %1 : vector<1x512x16xbf16> to vector<512x16xbf16>
    %cst = arith.constant dense<0.000000e+00> : vector<64x16xf32>
    %3 = tpu.matmul %0, %2, %cst {dimension_numbers = #tpu.dot_dimension_numbers<[1], [0], [0], [1], [0, 0, 1, 1], [], []>} : vector<64x512xbf16>, vector<512x16xbf16>, vector<64x16xf32> -> vector<64x16xf32>
    %cst_4 = arith.constant dense<0.000000e+00> : vector<64xf32>
    %4 = vector.multi_reduction <add>, %3, %cst_4 [1] : vector<64x16xf32> to vector<64xf32>
    %5 = vector.shape_cast %4 : vector<64xf32> to vector<64x1xf32>
    %cst_5 = arith.constant 1.600000e+01 : f32
    %6 = vector.broadcast %cst_5 : f32 to vector<64x1xf32>
    %7 = arith.divf %5, %6 : vector<64x1xf32>
    %8 = vector.broadcast %7 : vector<64x1xf32> to vector<64x16xf32>
    %9 = arith.subf %3, %8 : vector<64x16xf32>
    %10 = arith.mulf %9, %9 : vector<64x16xf32>
    %cst_6 = arith.constant dense<0.000000e+00> : vector<64xf32>
    %11 = vector.multi_reduction <add>, %10, %cst_6 [1] : vector<64x16xf32> to vector<64xf32>
    %12 = vector.shape_cast %11 : vector<64xf32> to vector<64x1xf32>
    %cst_7 = arith.constant 1.600000e+01 : f32
    %13 = vector.broadcast %cst_7 : f32 to vector<64x1xf32>
    %14 = arith.divf %12, %13 : vector<64x1xf32>
    %cst_8 = arith.constant 9.99999974E-6 : f32
    %15 = vector.broadcast %cst_8 : f32 to vector<64x1xf32>
    %16 = arith.addf %14, %15 : vector<64x1xf32>
    %17 = math.rsqrt %16 : vector<64x1xf32>
    %c0_9 = arith.constant 0 : index
    %c0_10 = arith.constant 0 : index
    %18 = vector.load %arg3[%c0_9, %c0_10] : memref<64x1xf32, #tpu.memory_space<vmem>>, vector<64x1xf32>
    %19 = arith.mulf %17, %18 : vector<64x1xf32>
    %20 = vector.broadcast %19 : vector<64x1xf32> to vector<64x16xf32>
    %21 = arith.mulf %9, %20 : vector<64x16xf32>
    %c0_11 = arith.constant 0 : index
    %c0_12 = arith.constant 0 : index
    %22 = vector.load %arg4[%c0_11, %c0_12] : memref<64x1xf32, #tpu.memory_space<vmem>>, vector<64x1xf32>
    %23 = vector.broadcast %22 : vector<64x1xf32> to vector<64x16xf32>
    %24 = arith.addf %21, %23 : vector<64x16xf32>
    %cst_13 = arith.constant 2.000000e-01 : f32
    %25 = vector.broadcast %cst_13 : f32 to vector<64x16xf32>
    %26 = arith.mulf %25, %24 : vector<64x16xf32>
    %27 = arith.maximumf %24, %26 : vector<64x16xf32>
    %c0_14 = arith.constant 0 : index
    %c0_15 = arith.constant 0 : index
    %28 = vector.load %arg5[%c0_14, %c0_15] : memref<64x16xf32, #tpu.memory_space<vmem>>, vector<64x16xf32>
    %29 = arith.mulf %27, %28 : vector<64x16xf32>
    %cst_16 = arith.constant dense<0.000000e+00> : vector<64xf32>
    %30 = vector.multi_reduction <add>, %29, %cst_16 [1] : vector<64x16xf32> to vector<64xf32>
    %31 = vector.shape_cast %30 : vector<64xf32> to vector<64x1xf32>
    %cst_17 = arith.constant dense<0.000000e+00> : vector<1xf32>
    %32 = vector.multi_reduction <add>, %31, %cst_17 [0] : vector<64x1xf32> to vector<1xf32>
    %33 = vector.shape_cast %32 : vector<1xf32> to vector<1x1xf32>
    %c0_18 = arith.constant 0 : index
    %c0_19 = arith.constant 0 : index
    %34 = vector.load %arg6[%c0_18, %c0_19] : memref<1x1xf32, #tpu.memory_space<vmem>>, vector<1x1xf32>
    %35 = arith.addf %33, %34 : vector<1x1xf32>
    %c0_20 = arith.constant 0 : index
    %c0_21 = arith.constant 0 : index
    %c0_22 = arith.constant 0 : index
    %36 = vector.load %arg7[%c0_20, %c0_21, %c0_22] : memref<1x1x1xf32, #tpu.memory_space<vmem>>, vector<1x1x1xf32>
    %37 = vector.shape_cast %36 : vector<1x1x1xf32> to vector<1x1xf32>
    %38 = vector.shape_cast %35 : vector<1x1xf32> to vector<1x1x1xf32>
    tpu.vector_store %arg7[%c0_20, %c0_21, %c0_22], %38 {strides = array<i32>} : memref<1x1x1xf32, #tpu.memory_space<vmem>>, vector<1x1x1xf32>,
    return
  }
  func.func @transform_0(%arg0: i32) -> (i32, i32, i32) {
    %c0_i32 = arith.constant 0 : i32
    %c0_i32_0 = arith.constant 0 : i32
    %c0_i32_1 = arith.constant 0 : i32
    return %arg0, %c0_i32, %c0_i32_0 : i32, i32, i32
  }
  func.func @transform_1(%arg0: i32) -> (i32, i32) {
    %c0_i32 = arith.constant 0 : i32
    %c0_i32_0 = arith.constant 0 : i32
    %c0_i32_1 = arith.constant 0 : i32
    return %c0_i32, %c0_i32_0 : i32, i32
  }
  func.func @transform_2(%arg0: i32) -> (i32, i32) {
    %c0_i32 = arith.constant 0 : i32
    %c0_i32_0 = arith.constant 0 : i32
    %c0_i32_1 = arith.constant 0 : i32
    return %c0_i32, %c0_i32_0 : i32, i32
  }
  func.func @transform_3(%arg0: i32) -> (i32, i32) {
    %c0_i32 = arith.constant 0 : i32
    %c0_i32_0 = arith.constant 0 : i32
    %c0_i32_1 = arith.constant 0 : i32
    return %c0_i32, %c0_i32_0 : i32, i32
  }
  func.func @transform_4(%arg0: i32) -> (i32, i32) {
    %c0_i32 = arith.constant 0 : i32
    %c0_i32_0 = arith.constant 0 : i32
    %c0_i32_1 = arith.constant 0 : i32
    return %c0_i32, %c0_i32_0 : i32, i32
  }
  func.func @transform_5(%arg0: i32) -> (i32, i32) {
    %c0_i32 = arith.constant 0 : i32
    %c0_i32_0 = arith.constant 0 : i32
    %c0_i32_1 = arith.constant 0 : i32
    return %c0_i32, %c0_i32_0 : i32, i32
  }
  func.func @transform_6(%arg0: i32) -> (i32, i32, i32) {
    %c0_i32 = arith.constant 0 : i32
    %c0_i32_0 = arith.constant 0 : i32
    %c0_i32_1 = arith.constant 0 : i32
    return %arg0, %c0_i32, %c0_i32_0 : i32, i32, i32
  }
}

</mosaic_0001>

<bundles_post_ra>
// kernel: critic_forward.4
= control target key start
LH: loop header
LB: loop body
LE: loop exit
PB: predicated region body
PF: predicated region fallthrough
CT: control target
= control target key end

     0   :  { %s754_s12 = smov 0   ;;  %s756_s13 = smov 0   ;;  %s868_s0 = inlined_call_operand.vmem [shape: bf16[2,64,1024], index: 0, kind: input, shape index: {}]   ;;  %s869_s1 = inlined_call_operand.vmem [shape: bf16[8,64], index: 1, kind: input, shape index: {}]   ;;  %s870_s2 = inlined_call_operand.vmem [shape: f32[8,1], index: 2, kind: input, shape index: {}]   ;;  %s871_s3 = inlined_call_operand.vmem [shape: bf16[2,8,1024], index: 3, kind: output, shape index: {}]  }
   0x1   :  { %s758_s14 = smov 0   ;;  %s760_s15 = smov 0  }
   0x2   :  { %s762_s16 = smov 0   ;;  %s764_s17 = smov 0  }
   0x3   :  { %s766_s18 = smov 0  }
   0x4 LB: > { %s22_s19 = sadd.s32 1, %s723_s16  ;;  %s25_s20 = sadd.s32 1, %s727_s17  ;;  %s731_s18 = sphi %s766_s18, %s13_s18   ;;  %s727_s17 = sphi %s764_s17, %s877_s17   ;;  %s723_s16 = sphi %s762_s16, %s876_s16   ;;  %s719_s15 = sphi %s760_s15, %s875_s15   ;;  %s715_s14 = sphi %s758_s14, %s874_s14   ;;  %s711_s13 = sphi %s756_s13, %s873_s13   ;;  %s707_s12 = sphi %s754_s12, %s872_s12  }
   0x5   : > { %p23_p0 = scmp.ge.s32.totalorder %s22_s19, 2  ;;  %p41_p1 = scmp.ne.s32.totalorder %s711_s13, %s707_s12 }
   0x6   : > { %p42_p2 = scmp.eq.s32.totalorder %s731_s18, 0  ;;  %s34_s24 = sadd.s32 1, %s711_s13 }
   0x7   : > { %s879_s19 = smov (%p23_p0, %s22_s19), 0  ;;  %s881_s20 = smov (!%p23_p0, %s25_s20), %s727_s17 }
   0x8   : > { %p43_p3 = por %p42_p2, %p41_p1  ;;  %p27_p4 = scmp.ge.s32.totalorder %s881_s20, 2 }
   0x9   : > { %s30_s21 = ssub.s32 %s723_s16, %s879_s19  ;;  %p561_p6 = scmp.ge.s32.totalorder %s731_s18, 4 }
   0xa   : > { %s883_s20 = smov (%p27_p4, %s881_s20), 0 }
   0xb   : > { %s29_s22 = ssub.s32 %s727_s17, %s883_s20  ;;  %143 = sbr.rel (%p561_p6) target bundleno = 33 (0x21), region = 24 }
   0xc   : > { %s31_s23 = sor.u32 %s30_s21, %s29_s22 }
   0xd   : > { %p32_p5 = scmp.eq.s32.totalorder %s31_s23, 0 }
   0xf   : > { %s805_s25 = scalar_select %p32_p5, %s711_s13, %s34_s24  }
  0x12   : > { %146 = sbr.rel (!%p43_p3) target bundleno = 33 (0x21), region = 28  ;;  %s148_s26 = sand.u32 (%p43_p3), 1, %s711_s13  }
  0x13   : > { %s563_s27 = sshll.u32 (%p43_p3), %s723_s16, 2  ;;  %s562_s28 = sshll.u32 (%p43_p3), %s148_s26, 7 }
  0x14   : > { %s564_s29 = sshll.u32 (%p43_p3), %s727_s17, 6  ;;  %s150_s8 = scalar_lea.vmem (%p43_p3), [#allocation2], %s562_s28 }
  0x15   : > { %s153_s30 = sadd.s32 (%p43_p3), %s564_s29, %s563_s27 }
  0x16   : > { %s565_s4 = sshll.u32 (%p43_p3), %s153_s30, 2 }
  0x17   : > { %s814_s7 = scalar_lea.vmem (%p43_p3), %s868_s0, %s565_s4 }
  0x18   : > { %v168_v0 = vld [vmem:[%s814_s7] sm:$0xff] (%p43_p3)  ;;  %v170_v1 = vld [vmem:[%s814_s7 + $0x8] sm:$0xff] (%p43_p3) }
  0x19   : > { %v172_v2 = vld [vmem:[%s814_s7 + $0x20] sm:$0xff]  ;;  %169 = vst [vmem:[%s150_s8] sm:$0xff] %v168_v0  ;;  %171 = vst [vmem:[%s150_s8 + $0x8] sm:$0xff] %v170_v1  ;;  %v174_v3 = vld [vmem:[%s814_s7 + $0x28] sm:$0xff] }
  0x1a   : > { %173 = vst [vmem:[%s150_s8 + $0x10] sm:$0xff] %v172_v2  ;;  %v176_v4 = vld [vmem:[%s814_s7 + $0x40] sm:$0xff]  ;;  %v178_v5 = vld [vmem:[%s814_s7 + $0x48] sm:$0xff]  ;;  %175 = vst [vmem:[%s150_s8 + $0x18] sm:$0xff] %v174_v3 }
  0x1b   : > { %177 = vst [vmem:[%s150_s8 + $0x20] sm:$0xff] %v176_v4  ;;  %179 = vst [vmem:[%s150_s8 + $0x28] sm:$0xff] %v178_v5  ;;  %v180_v6 = vld [vmem:[%s814_s7 + $0x60] sm:$0xff]  ;;  %v182_v7 = vld [vmem:[%s814_s7 + $0x68] sm:$0xff] }
  0x1c   : > { %v184_v8 = vld [vmem:[%s814_s7 + $0x80] sm:$0xff]  ;;  %181 = vst [vmem:[%s150_s8 + $0x30] sm:$0xff] %v180_v6  ;;  %183 = vst [vmem:[%s150_s8 + $0x38] sm:$0xff] %v182_v7  ;;  %v186_v9 = vld [vmem:[%s814_s7 + $0x88] sm:$0xff] }
  0x1d   : > { %185 = vst [vmem:[%s150_s8 + $0x40] sm:$0xff] %v184_v8  ;;  %v188_v10 = vld [vmem:[%s814_s7 + $0xa0] sm:$0xff]  ;;  %v190_v11 = vld [vmem:[%s814_s7 + $0xa8] sm:$0xff]  ;;  %187 = vst [vmem:[%s150_s8 + $0x48] sm:$0xff] %v186_v9 }
  0x1e   : > { %189 = vst [vmem:[%s150_s8 + $0x50] sm:$0xff] %v188_v10  ;;  %191 = vst [vmem:[%s150_s8 + $0x58] sm:$0xff] %v190_v11  ;;  %v192_v12 = vld [vmem:[%s814_s7 + $0xc0] sm:$0xff]  ;;  %v194_v13 = vld [vmem:[%s814_s7 + $0xc8] sm:$0xff] }
  0x1f   : > { %v196_v14 = vld [vmem:[%s814_s7 + $0xe0] sm:$0xff]  ;;  %193 = vst [vmem:[%s150_s8 + $0x60] sm:$0xff] %v192_v12  ;;  %195 = vst [vmem:[%s150_s8 + $0x68] sm:$0xff] %v194_v13  ;;  %v198_v15 = vld [vmem:[%s814_s7 + $0xe8] sm:$0xff] }
  0x20   : > { %197 = vst [vmem:[%s150_s8 + $0x70] sm:$0xff] %v196_v14  ;;  %199 = vst [vmem:[%s150_s8 + $0x78] sm:$0xff] %v198_v15 }
  0x21 PF: > { %p566_p7 = scmp.ge.s32.totalorder %s731_s18, 1  ;;  %p204_p8 = scmp.lt.s32.totalorder %s731_s18, 5 }
  0x23   : > { %p205_p9 = pnand %p566_p7, %p204_p8 }
  0x24   : > { %s211_s9 = sand.u32 (!%p205_p9), 1, %s707_s12   ;;  %v267_v16 = vld [vmem:[%s870_s2] sm:$0xff] (!%p205_p9)  ;;  %v733_v17 = vmov (!%p205_p9), 0   ;;  %vm353_vm0 = vcmask (!%p205_p9), 523264   ;;  %s568_s24 = sshll.u32 (!%p205_p9), %s715_s14, 2 }
  0x25   : > { %208 = sbr.rel (%p205_p9) target bundleno = 278 (0x116), region = 51  ;;  %s567_s21 = sshll.u32 (!%p205_p9), %s211_s9, 7  ;;  %389 = vmatprep.mubr.bf16.mxu0 (!%p205_p9), %v733_v17  ;;  %430 = vmatprep.mubr.bf16.mxu1 (!%p205_p9), %v733_v17  ;;  %v250_v34 = vld [vmem:[%s869_s1] sm:$0xf] (!%p205_p9) }
  0x26   : > { %652 = vset.pattern.permute.xlu0 (!%p205_p9), %v733_v17  ;;  %s213_s22 = scalar_lea.vmem (!%p205_p9), [#allocation2], %s567_s21  ;;  %p240_p10 = scmp.lt.s32.totalorder (!%p205_p9), %s719_s15, 1 }
  0x27   : > { %v653_v18 = vld [vmem:[%s213_s22 + $0x4] ss:$16 sps:$4 sm:$0xff] (!%p205_p9)   ;;  %270 = vperm.xlu0 (!%p205_p9), %652, %v267_v16   ;;  %v655_v19 = vld [vmem:[%s213_s22 + $0xc] ss:$16 sps:$4 sm:$0xff] (!%p205_p9)   ;;  %v657_v20 = vld [vmem:[%s213_s22] ss:$16 sps:$4 sm:$0xff] (!%p205_p9)  }
  0x28   : > { %357 = vmatprep.subr.bf16.mxu0 (!%p205_p9), %v653_v18  ;;  %v658_v21 = vld [vmem:[%s213_s22 + $0x8] ss:$16 sps:$4 sm:$0xff] (!%p205_p9)   ;;  %398 = vmatprep.subr.bf16.mxu1 (!%p205_p9), %v655_v19  ;;  %v659_v22 = vld [vmem:[%s213_s22 + $0x24] ss:$16 sps:$4 sm:$0xff] (!%p205_p9)   ;;  %v661_v23 = vld [vmem:[%s213_s22 + $0x2c] ss:$16 sps:$4 sm:$0xff] (!%p205_p9)  }
  0x29   : > { %358 = vmatpush1.bf16.msra.mxu0 (!%p205_p9), %v657_v20  ;;  %399 = vmatpush1.bf16.msra.mxu1 (!%p205_p9), %v658_v21  ;;  %v663_v24 = vld [vmem:[%s213_s22 + $0x20] ss:$16 sps:$4 sm:$0xff] (!%p205_p9)   ;;  %v664_v25 = vld [vmem:[%s213_s22 + $0x28] ss:$16 sps:$4 sm:$0xff] (!%p205_p9)   ;;  %v665_v26 = vld [vmem:[%s213_s22 + $0x44] ss:$16 sps:$4 sm:$0xff] (!%p205_p9)  }
  0x2a   : > { %359 = vmatprep.subr.bf16.mxu0 (!%p205_p9), %v659_v22  ;;  %400 = vmatprep.subr.bf16.mxu1 (!%p205_p9), %v661_v23  ;;  %v667_v27 = vld [vmem:[%s213_s22 + $0x4c] ss:$16 sps:$4 sm:$0xff] (!%p205_p9)   ;;  %v669_v28 = vld [vmem:[%s213_s22 + $0x40] ss:$16 sps:$4 sm:$0xff] (!%p205_p9)   ;;  %v670_v29 = vld [vmem:[%s213_s22 + $0x48] ss:$16 sps:$4 sm:$0xff] (!%p205_p9)  }
  0x2b   : > { %v671_v30 = vld [vmem:[%s213_s22 + $0x64] ss:$16 sps:$4 sm:$0xff] (!%p205_p9)   ;;  %v673_v31 = vld [vmem:[%s213_s22 + $0x6c] ss:$16 sps:$4 sm:$0xff] (!%p205_p9)   ;;  %v675_v32 = vld [vmem:[%s213_s22 + $0x60] ss:$16 sps:$4 sm:$0xff] (!%p205_p9)  }
  0x2c   : > { %v676_v33 = vld [vmem:[%s213_s22 + $0x68] ss:$16 sps:$4 sm:$0xff]   ;;  %p242_p11 = scmp.lt.s32.totalorder %s568_s24, 7  ;;  %s885_s15 = smov (!%p240_p10, %s719_s15), 1 }
  0x2d   : > { %360 = vmatpush1.bf16.msra.mxu0 %v663_v24  ;;  %401 = vmatpush1.bf16.msra.mxu1 %v664_v25  ;;  %s569_s26 = sshll.u32 %s885_s15, 3 }
  0x2e   : > { %361 = vmatprep.subr.bf16.mxu0 %v665_v26  ;;  %402 = vmatprep.subr.bf16.mxu1 %v667_v27  ;;  %s887_s24 = smov (!%p242_p11, %s568_s24), 7 }
  0x2f   : > { %s245_s27 = sadd.s32 %s569_s26, %s887_s24 }
  0x30   : > { %s570_s14 = sshll.u32 %s245_s27, 2 }
  0x31   : > { %362 = vmatpush1.bf16.msra.mxu0 %v669_v28  ;;  %403 = vmatpush1.bf16.msra.mxu1 %v670_v29  ;;  %s247_s29 = scalar_lea.vmem %s871_s3, %s570_s14 }
  0x32   : > { %363 = vmatprep.subr.bf16.mxu0 %v671_v30  ;;  %404 = vmatprep.subr.bf16.mxu1 %v673_v31 }
  0x35   : > { %364 = vmatpush1.bf16.msra.mxu0 %v675_v32  ;;  %405 = vmatpush1.bf16.msra.mxu1 %v676_v33 }
  0x38   : > { %587 = vmatmul.mubr.msk.bf16.vlgmr.msra.gmra.mrb[0].mxu0 %vm353_vm0, %v250_v34  ;;  %588 = vmatmul.mubr.msk.bf16.vlgmr.msra.gmra.mrb[0].mxu1 %vm353_vm0, %v250_v34 }
  0xa6   : > { %v271_v35 = vpop.permute.xlu0 %270 }
 0x10b   : > { %v391_v36 = vpop.f32.mrb[0].mxu0  ;;  %v432_v37 = vpop.f32.mrb[0].mxu1 }
 0x10c   : > { %v392_v38 = vadd.f32 %v391_v36, %v271_v35  ;;  %v433_v39 = vadd.f32 %v432_v37, %v271_v35  ;;  %v393_v40 = vpop.f32.mrb[1].mxu0  ;;  %v434_v41 = vpop.f32.mrb[1].mxu1 }
 0x10d   : > { %v394_v42 = vadd.f32 %v393_v40, %v271_v35  ;;  %v435_v43 = vadd.f32 %v434_v41, %v271_v35  ;;  %v395_v44 = vpop.f32.mrb[2].mxu0  ;;  %v436_v45 = vpop.f32.mrb[2].mxu1 }
 0x10e   : > { %v439_v46 = vmul.f32 0.2, %v392_v38  ;;  %v441_v47 = vmul.f32 0.2, %v433_v39  ;;  %v396_v48 = vpop.f32.mrb[3].mxu0  ;;  %v437_v49 = vpop.f32.mrb[3].mxu1 }
 0x10f   : > { %v440_v50 = vmul.f32 0.2, %v394_v42  ;;  %v442_v51 = vmul.f32 0.2, %v435_v43 }
 0x110   : > { %v443_v52 = vmax.f32 %v392_v38, %v439_v46  ;;  %v445_v53 = vmax.f32 %v433_v39, %v441_v47 }
 0x111   : > { %v444_v54 = vmax.f32 %v394_v42, %v440_v50  ;;  %v446_v55 = vmax.f32 %v435_v43, %v442_v51 }
 0x113   : > { %v593_v56 = vpack.c.bf16 %v444_v54, %v443_v52  ;;  %v594_v57 = vpack.c.bf16 %v446_v55, %v445_v53 }
 0x115   : > { %463 = vst [vmem:[%s247_s29] sm:$0xff] %v593_v56  ;;  %464 = vst [vmem:[%s247_s29 + $0x8] sm:$0xff] %v594_v57 }
 0x116 PF: > { %s13_s18 = sadd.s32 1, %s731_s18   ;;  %s872_s12 = smov %s711_s13 }
 0x117   : > { %p10_p12 = scmp.ge.s32.totalorder %s13_s18, 6   ;;  %s873_s13 = smov %s805_s25 }
 0x118   : > { %s874_s14 = smov %s723_s16  ;;  %s875_s15 = smov %s727_s17 }
 0x119   : > { %s876_s16 = smov %s879_s19  ;;  %s877_s17 = smov %s883_s20 }
 0x11a   :  { %12 = sbr.rel (!%p10_p12) target bundleno = 4 (0x4), region = 90 }

// kernel: critic_forward.5
= control target key start
LH: loop header
LB: loop body
LE: loop exit
PB: predicated region body
PF: predicated region fallthrough
CT: control target
= control target key end

     0   :  { %s594_s15 = smov 0   ;;  %s630_s0 = inlined_call_operand.vmem [shape: bf16[2,128,256], index: 0, kind: input, shape index: {}]   ;;  %s631_s1 = inlined_call_operand.vmem [shape: bf16[16,128], index: 1, kind: input, shape index: {}]   ;;  %s632_s2 = inlined_call_operand.vmem [shape: f32[16,1], index: 2, kind: input, shape index: {}]   ;;  %s633_s3 = inlined_call_operand.vmem [shape: f32[16,1], index: 3, kind: input, shape index: {}]   ;;  %s634_s4 = inlined_call_operand.vmem [shape: bf16[2,16,256], index: 4, kind: output, shape index: {}]  }
   0x1 LB: > { %s486_s16 = sadd.s32 4294967295, %s566_s15   ;;  %p490_p0 = scmp.ge.s32.totalorder %s566_s15, 1  ;;  %s566_s15 = sphi %s594_s15, %s14_s15  }
   0x2   : > { %p162_p1 = scmp.lt.s32.totalorder %s566_s15, 3 }
   0x4   : > { %p163_p2 = pnand %p490_p0, %p162_p1 }
   0x5   : > { %p188_p3 = scmp.lt.s32.totalorder (!%p163_p2), %s486_s16, 1  ;;  %v568_v0 = vmov (!%p163_p2), 0   ;;  %v555_v17 = vld [vmem:[%s631_s1] sm:$0xff] (!%p163_p2)   ;;  %v376_v48 = vld [vmem:[%s632_s2 + $0x8] sm:$0xff] (!%p163_p2) }
   0x6   : > { %166 = sbr.rel (%p163_p2) target bundleno = 718 (0x2ce), region = 36  ;;  %335 = vmatprep.mubr.bf16.mxu0 (!%p163_p2), %v568_v0  ;;  %530 = vset.pattern.permute.xlu1 (!%p163_p2), %v568_v0  ;;  %v393_v38 = vld [vmem:[%s633_s3] sm:$0xff] (!%p163_p2)  ;;  %v394_v51 = vld [vmem:[%s633_s3 + $0x8] sm:$0xff] (!%p163_p2) }
   0x7   : > { %529 = vset.pattern.permute.xlu0 (!%p163_p2), %v568_v0  ;;  %v375_v45 = vld [vmem:[%s632_s2] sm:$0xff] (!%p163_p2) }
   0xd   : > { %s636_s16 = smov (!%p188_p3, %s486_s16), 1 }
   0xe   : > { %s516_s17 = sshll.u32 %s636_s16, 7  ;;  %s517_s5 = sshll.u32 %s636_s16, 4 }
   0xf   : > { %s192_s20 = scalar_lea.vmem %s630_s0, %s516_s17  ;;  %s197_s8 = scalar_lea.vmem %s634_s4, %s517_s5 }
  0x10   : > { %v531_v1 = vld [vmem:[%s192_s20 + $0x4] ss:$8 sps:$4 sm:$0xff]   ;;  %v533_v2 = vld [vmem:[%s192_s20] ss:$8 sps:$4 sm:$0xff]   ;;  %v534_v3 = vld [vmem:[%s192_s20 + $0x14] ss:$8 sps:$4 sm:$0xff]  }
  0x11   : > { %303 = vmatprep.subr.bf16.mxu0 %v531_v1  ;;  %v536_v4 = vld [vmem:[%s192_s20 + $0x10] ss:$8 sps:$4 sm:$0xff]   ;;  %v537_v5 = vld [vmem:[%s192_s20 + $0x24] ss:$8 sps:$4 sm:$0xff]   ;;  %v539_v6 = vld [vmem:[%s192_s20 + $0x20] ss:$8 sps:$4 sm:$0xff]  }
  0x12   : > { %304 = vmatpush1.bf16.msra.mxu0 %v533_v2  ;;  %v540_v7 = vld [vmem:[%s192_s20 + $0x34] ss:$8 sps:$4 sm:$0xff]   ;;  %v542_v8 = vld [vmem:[%s192_s20 + $0x30] ss:$8 sps:$4 sm:$0xff]   ;;  %v543_v9 = vld [vmem:[%s192_s20 + $0x44] ss:$8 sps:$4 sm:$0xff]  }
  0x13   : > { %305 = vmatprep.subr.bf16.mxu0 %v534_v3  ;;  %v545_v10 = vld [vmem:[%s192_s20 + $0x40] ss:$8 sps:$4 sm:$0xff]   ;;  %v546_v11 = vld [vmem:[%s192_s20 + $0x54] ss:$8 sps:$4 sm:$0xff]   ;;  %v548_v12 = vld [vmem:[%s192_s20 + $0x50] ss:$8 sps:$4 sm:$0xff]  }
  0x14   : > { %v549_v13 = vld [vmem:[%s192_s20 + $0x64] ss:$8 sps:$4 sm:$0xff]   ;;  %v551_v14 = vld [vmem:[%s192_s20 + $0x60] ss:$8 sps:$4 sm:$0xff]   ;;  %v552_v15 = vld [vmem:[%s192_s20 + $0x74] ss:$8 sps:$4 sm:$0xff]  }
  0x15   : > { %v554_v16 = vld [vmem:[%s192_s20 + $0x70] ss:$8 sps:$4 sm:$0xff]  }
  0x16   : > { %306 = vmatpush1.bf16.msra.mxu0 %v536_v4 }
  0x17   : > { %307 = vmatprep.subr.bf16.mxu0 %v537_v5 }
  0x1a   : > { %308 = vmatpush1.bf16.msra.mxu0 %v539_v6 }
  0x1b   : > { %309 = vmatprep.subr.bf16.mxu0 %v540_v7 }
  0x1e   : > { %310 = vmatpush1.bf16.msra.mxu0 %v542_v8 }
  0x1f   : > { %311 = vmatprep.subr.bf16.mxu0 %v543_v9 }
  0x22   : > { %312 = vmatpush1.bf16.msra.mxu0 %v545_v10 }
  0x23   : > { %313 = vmatprep.subr.bf16.mxu0 %v546_v11 }
  0x26   : > { %314 = vmatpush1.bf16.msra.mxu0 %v548_v12 }
  0x27   : > { %315 = vmatprep.subr.bf16.mxu0 %v549_v13 }
  0x2a   : > { %316 = vmatpush1.bf16.msra.mxu0 %v551_v14 }
  0x2b   : > { %317 = vmatprep.subr.bf16.mxu0 %v552_v15 }
  0x2e   : > { %318 = vmatpush1.bf16.msra.mxu0 %v554_v16 }
  0x31   : > { %336 = vmatmul.mubr.bf16.vlgmr.msra.gmra.mrb[0].mxu0 %v555_v17 }
 0x104   : > { %v337_v18 = vpop.f32.mrb[0].mxu0 }
 0x105   : > { %v339_v19 = vpop.f32.mrb[1].mxu0 }
 0x106   : > { %v341_v20 = vpop.f32.mrb[2].mxu0  ;;  %v346_v21 = vadd.f32 %v339_v19, %v337_v18 }
 0x107   : > { %v343_v22 = vpop.f32.mrb[3].mxu0 }
 0x108   : > { %v349_v23 = vadd.f32 %v343_v22, %v341_v20  ;;  %347 = vadd.xlane.f32.xlu0 %v346_v21 }
 0x10c   : > { %350 = vadd.xlane.f32.xlu0 %v349_v23 }
 0x195   : > { %v348_v24 = vpop.xlane.xlu0 %347 }
 0x196   : > { %v353_v25 = vmul.f32 0.00390625, %v348_v24 }
 0x198   : > { %v355_v26 = vsub.f32 %v337_v18, %v353_v25  ;;  %v356_v27 = vsub.f32 %v339_v19, %v353_v25 }
 0x199   : > { %v351_v28 = vpop.xlane.xlu0 %350 }
 0x19a   : > { %v354_v29 = vmul.f32 0.00390625, %v351_v28  ;;  %v359_v30 = vmul.f32 %v355_v26, %v355_v26  ;;  %v360_v31 = vmul.f32 %v356_v27, %v356_v27 }
 0x19c   : > { %v357_v32 = vsub.f32 %v341_v20, %v354_v29  ;;  %v358_v33 = vsub.f32 %v343_v22, %v354_v29  ;;  %v363_v34 = vadd.f32 %v360_v31, %v359_v30 }
 0x19e   : > { %364 = vadd.xlane.f32.xlu1 %v363_v34  ;;  %v361_v35 = vmul.f32 %v357_v32, %v357_v32  ;;  %v362_v36 = vmul.f32 %v358_v33, %v358_v33 }
 0x1a0   : > { %v366_v37 = vadd.f32 %v362_v36, %v361_v35 }
 0x1a2   : > { %367 = vadd.xlane.f32.xlu1 %v366_v37 }
 0x1b3   : > { %397 = vperm.xlu1 %530, %v393_v38  }
 0x22b   : > { %v365_v39 = vpop.xlane.xlu1 %364 }
 0x22c   : > { %v369_v40 = vmul.f32 0.00390625, %v365_v39 }
 0x22e   : > { %v371_v41 = vadd.f32 1e-05, %v369_v40 }
 0x22f   : > { %v368_v42 = vpop.xlane.xlu1 %367 }
 0x230   : > { %556 = vrsqrt.f32 %v371_v41  ;;  %v370_v43 = vmul.f32 0.00390625, %v368_v42 }
 0x232   : > { %v372_v44 = vadd.f32 1e-05, %v370_v43 }
 0x233   : > { %v398_v52 = vpop.permute.xlu1 %397 }
 0x234   : > { %558 = vrsqrt.f32 %v372_v44 }
 0x23a   : > { %v557_v46 = vpop.eup %556 }
 0x23b   : > { %v377_v47 = vmul.f32 %v557_v46, %v375_v45 }
 0x23d   : > { %381 = vperm.xlu0 %529, %v377_v47  }
 0x23e   : > { %v559_v49 = vpop.eup %558 }
 0x23f   : > { %v378_v50 = vmul.f32 %v559_v49, %v376_v48 }
 0x241   : > { %386 = vperm.xlu1 %530, %v378_v50  }
 0x245   : > { %402 = vperm.xlu1 %530, %v394_v51  }
 0x2bc   : > { %v382_v53 = vpop.permute.xlu0 %381 }
 0x2bd   : > { %v389_v54 = vmul.f32 %v382_v53, %v355_v26  ;;  %v390_v55 = vmul.f32 %v382_v53, %v356_v27 }
 0x2bf   : > { %v405_v56 = vadd.f32 %v398_v52, %v389_v54  ;;  %v406_v57 = vadd.f32 %v398_v52, %v390_v55 }
 0x2c0   : > { %v387_v58 = vpop.permute.xlu1 %386 }
 0x2c1   : > { %v409_v59 = vmul.f32 0.2, %v405_v56  ;;  %v410_v60 = vmul.f32 0.2, %v406_v57  ;;  %v391_v63 = vmul.f32 %v387_v58, %v357_v32  ;;  %v392_v0 = vmul.f32 %v387_v58, %v358_v33 }
 0x2c3   : > { %v413_v61 = vmax.f32 %v405_v56, %v409_v59  ;;  %v414_v62 = vmax.f32 %v406_v57, %v410_v60 }
 0x2c4   : > { %v403_v1 = vpop.permute.xlu1 %402 }
 0x2c5   : > { %v518_v2 = vpack.c.bf16 %v414_v62, %v413_v61  ;;  %v407_v3 = vadd.f32 %v403_v1, %v391_v63  ;;  %v408_v4 = vadd.f32 %v403_v1, %v392_v0 }
 0x2c7   : > { %v411_v5 = vmul.f32 0.2, %v407_v3  ;;  %v412_v6 = vmul.f32 0.2, %v408_v4  ;;  %429 = vst [vmem:[%s197_s8] sm:$0xff] %v518_v2 }
 0x2c9   : > { %v415_v7 = vmax.f32 %v407_v3, %v411_v5  ;;  %v416_v8 = vmax.f32 %v408_v4, %v412_v6 }
 0x2cb   : > { %v519_v9 = vpack.c.bf16 %v416_v8, %v415_v7 }
 0x2cd   : > { %430 = vst [vmem:[%s197_s8 + $0x8] sm:$0xff] %v519_v9 }
 0x2ce PF: > { %s14_s15 = sadd.s32 1, %s566_s15  }
 0x2cf   : > { %p11_p4 = scmp.ge.s32.totalorder %s14_s15, 4  }
 0x2d1   :  { %13 = sbr.rel (!%p11_p4) target bundleno = 1 (0x1), region = 66 }

// kernel: critic_forward.6
= control target key start
LH: loop header
LB: loop body
LE: loop exit
PB: predicated region body
PF: predicated region fallthrough
CT: control target
= control target key end

     0   :  { %s754_s15 = smov 0   ;;  %s861_s0 = inlined_call_operand.vmem [shape: bf16[2,256,64], index: 0, kind: input, shape index: {}]   ;;  %s862_s1 = inlined_call_operand.vmem [shape: bf16[32,256], index: 1, kind: input, shape index: {}]   ;;  %s863_s2 = inlined_call_operand.vmem [shape: f32[32,1], index: 2, kind: input, shape index: {}]   ;;  %s864_s3 = inlined_call_operand.vmem [shape: f32[32,1], index: 3, kind: input, shape index: {}]   ;;  %s865_s4 = inlined_call_operand.vmem [shape: bf16[2,32,64], index: 4, kind: output, shape index: {}]  }
   0x1 LB: > { %s594_s16 = sadd.s32 4294967295, %s726_s15   ;;  %p598_p0 = scmp.ge.s32.totalorder %s726_s15, 1  ;;  %s726_s15 = sphi %s754_s15, %s14_s15  }
   0x2   : > { %p162_p1 = scmp.lt.s32.totalorder %s726_s15, 3 }
   0x4   : > { %p163_p2 = pnand %p598_p0, %p162_p1 }
   0x5   : > { %p188_p3 = scmp.lt.s32.totalorder (!%p163_p2), %s594_s16, 1  ;;  %v708_v0 = vld [vmem:[%s862_s1 + $0x4] ss:$8 sps:$4 sm:$0xff] (!%p163_p2)   ;;  %v711_v1 = vld [vmem:[%s862_s1 + $0x14] ss:$8 sps:$4 sm:$0xff] (!%p163_p2)   ;;  %vm400_vm0 = vcmask (!%p163_p2), 523264  }
   0x6   : > { %166 = sbr.rel (%p163_p2) target bundleno = 726 (0x2d6), region = 36  ;;  %383 = vmatprep.mubr.bf16.mxu0 (!%p163_p2), %v708_v0  ;;  %391 = vmatprep.mubr.bf16.mxu1 (!%p163_p2), %v711_v1  ;;  %v706_v18 = vld [vmem:[%s862_s1] ss:$8 sps:$4 sm:$0xff] (!%p163_p2)   ;;  %v709_v19 = vld [vmem:[%s862_s1 + $0x10] ss:$8 sps:$4 sm:$0xff] (!%p163_p2)   ;;  %v728_v56 = vmov (!%p163_p2), 0  }
   0x7   : > { %689 = vset.pattern.permute.xlu1 (!%p163_p2), %v728_v56  ;;  %688 = vset.pattern.permute.xlu0 (!%p163_p2), %v728_v56  ;;  %v482_v57 = vld [vmem:[%s864_s3] sm:$0xff] (!%p163_p2)  ;;  %v483_v58 = vld [vmem:[%s864_s3 + $0x8] sm:$0xff] (!%p163_p2)  ;;  %v484_v59 = vld [vmem:[%s864_s3 + $0x10] sm:$0xff] (!%p163_p2)  ;;  %vm534_vm1 = vcmask (!%p163_p2), 519168  }
   0xd   : > { %s867_s16 = smov (!%p188_p3, %s594_s16), 1 }
   0xe   : > { %s629_s21 = sshll.u32 %s867_s16, 7 }
   0xf   : > { %s774_s24 = scalar_lea.vmem %s861_s0, %s629_s21  ;;  %s630_s21 = sshll.u32 %s867_s16, 4 }
  0x10   : > { %v690_v2 = vld [vmem:[%s774_s24 + $0x40] sm:$0xff]   ;;  %v692_v4 = vld [vmem:[%s774_s24 + $0x48] sm:$0xff]   ;;  %v694_v6 = vld [vmem:[%s774_s24 + $0x50] sm:$0xff]  }
  0x11   : > { %v691_v3 = vld [vmem:[%s774_s24] sm:$0xff]   ;;  %635 = vmatprep.subr.bf16.mxu0 %v690_v2  ;;  %663 = vmatprep.subr.bf16.mxu1 %v690_v2  ;;  %v693_v5 = vld [vmem:[%s774_s24 + $0x8] sm:$0xff]   ;;  %v695_v7 = vld [vmem:[%s774_s24 + $0x10] sm:$0xff]  }
  0x12   : > { %636 = vmatpush3.bf16.msra.mxu0 %v691_v3  ;;  %671 = vmatpush3.bf16.msra.mxu1 %v691_v3  ;;  %v696_v8 = vld [vmem:[%s774_s24 + $0x58] sm:$0xff]   ;;  %v698_v10 = vld [vmem:[%s774_s24 + $0x60] sm:$0xff]   ;;  %v700_v12 = vld [vmem:[%s774_s24 + $0x68] sm:$0xff]  }
  0x13   : > { %637 = vmatprep.subr.bf16.mxu0 %v692_v4  ;;  %664 = vmatprep.subr.bf16.mxu1 %v692_v4  ;;  %v697_v9 = vld [vmem:[%s774_s24 + $0x18] sm:$0xff]   ;;  %v699_v11 = vld [vmem:[%s774_s24 + $0x20] sm:$0xff]   ;;  %v701_v13 = vld [vmem:[%s774_s24 + $0x28] sm:$0xff]  }
  0x14   : > { %v702_v14 = vld [vmem:[%s774_s24 + $0x70] sm:$0xff]   ;;  %v704_v16 = vld [vmem:[%s774_s24 + $0x78] sm:$0xff]  }
  0x15   : > { %v703_v15 = vld [vmem:[%s774_s24 + $0x30] sm:$0xff]   ;;  %v705_v17 = vld [vmem:[%s774_s24 + $0x38] sm:$0xff]   ;;  %s197_s24 = scalar_lea.vmem %s865_s4, %s630_s21 }
  0x16   : > { %638 = vmatpush3.bf16.msra.mxu0 %v693_v5  ;;  %672 = vmatpush3.bf16.msra.mxu1 %v693_v5 }
  0x17   : > { %639 = vmatprep.subr.bf16.mxu0 %v694_v6  ;;  %665 = vmatprep.subr.bf16.mxu1 %v694_v6 }
  0x1a   : > { %640 = vmatpush3.bf16.msra.mxu0 %v695_v7  ;;  %673 = vmatpush3.bf16.msra.mxu1 %v695_v7 }
  0x1b   : > { %641 = vmatprep.subr.bf16.mxu0 %v696_v8  ;;  %666 = vmatprep.subr.bf16.mxu1 %v696_v8  ;;  %v450_v8 = vld [vmem:[%s863_s2] sm:$0xff] }
  0x1e   : > { %642 = vmatpush3.bf16.msra.mxu0 %v697_v9  ;;  %674 = vmatpush3.bf16.msra.mxu1 %v697_v9 }
  0x1f   : > { %643 = vmatprep.subr.bf16.mxu0 %v698_v10  ;;  %667 = vmatprep.subr.bf16.mxu1 %v698_v10 }
  0x22   : > { %644 = vmatpush3.bf16.msra.mxu0 %v699_v11  ;;  %675 = vmatpush3.bf16.msra.mxu1 %v699_v11  ;;  %v452_v11 = vld [vmem:[%s863_s2 + $0x10] sm:$0xff] }
  0x23   : > { %645 = vmatprep.subr.bf16.mxu0 %v700_v12  ;;  %668 = vmatprep.subr.bf16.mxu1 %v700_v12 }
  0x26   : > { %646 = vmatpush3.bf16.msra.mxu0 %v701_v13  ;;  %676 = vmatpush3.bf16.msra.mxu1 %v701_v13 }
  0x27   : > { %647 = vmatprep.subr.bf16.mxu0 %v702_v14  ;;  %669 = vmatprep.subr.bf16.mxu1 %v702_v14 }
  0x2a   : > { %648 = vmatpush3.bf16.msra.mxu0 %v703_v15  ;;  %677 = vmatpush3.bf16.msra.mxu1 %v703_v15  ;;  %v451_v15 = vld [vmem:[%s863_s2 + $0x8] sm:$0xff] }
  0x2b   : > { %649 = vmatprep.subr.bf16.mxu0 %v704_v16  ;;  %670 = vmatprep.subr.bf16.mxu1 %v704_v16 }
  0x2e   : > { %650 = vmatpush3.bf16.msra.mxu0 %v705_v17  ;;  %678 = vmatpush3.bf16.msra.mxu1 %v705_v17 }
  0x31   : > { %384 = vmatmul.mubr.bf16.vlgmr.msra.gmra.mrb[0].mxu0 %v706_v18  ;;  %392 = vmatmul.mubr.bf16.vlgmr.msra.gmra.mrb[0].mxu1 %v709_v19  ;;  %v453_v18 = vld [vmem:[%s863_s2 + $0x18] sm:$0xff] }
 0x104   : > { %v651_v20 = vpop.f32.mrb[0].mxu0  ;;  %v657_v21 = vpop.f32.mrb[0].mxu1 }
 0x105   : > { %v652_v22 = vpop.f32.mrb[1].mxu0  ;;  %v658_v23 = vpop.f32.mrb[1].mxu1 }
 0x106   : > { %v653_v24 = vadd.f32 %v652_v22, %v651_v20  ;;  %v659_v25 = vadd.f32 %v658_v23, %v657_v21  ;;  %v654_v26 = vpop.f32.mrb[2].mxu0  ;;  %v660_v27 = vpop.f32.mrb[2].mxu1  ;;  %v485_v20 = vld [vmem:[%s864_s3 + $0x18] sm:$0xff] }
 0x107   : > { %v655_v28 = vpop.f32.mrb[3].mxu0  ;;  %v661_v29 = vpop.f32.mrb[3].mxu1 }
 0x108   : > { %v656_v30 = vadd.f32 %v655_v28, %v654_v26  ;;  %v662_v31 = vadd.f32 %v661_v29, %v660_v27  ;;  %v407_v32 = vsel %vm400_vm0, %v659_v25, 0.0  ;;  %v401_v33 = vsel %vm400_vm0, %v653_v24, 0.0 }
 0x109   : > { %408 = vadd.xlane.f32.xlu1 %v407_v32  ;;  %402 = vadd.xlane.f32.xlu0 %v401_v33 }
 0x10a   : > { %v410_v34 = vsel %vm400_vm0, %v662_v31, 0.0  ;;  %v404_v35 = vsel %vm400_vm0, %v656_v30, 0.0 }
 0x10d   : > { %411 = vadd.xlane.f32.xlu1 %v410_v34  ;;  %405 = vadd.xlane.f32.xlu0 %v404_v35 }
 0x196   : > { %v409_v36 = vpop.xlane.xlu1 %408  ;;  %v403_v37 = vpop.xlane.xlu0 %402 }
 0x197   : > { %v416_v38 = vmul.f32 0.015625, %v409_v36  ;;  %v414_v39 = vmul.f32 0.015625, %v403_v37 }
 0x199   : > { %v802_v40 = vsub.f32 %v659_v25, %v416_v38  ;;  %v804_v41 = vsub.f32 %v653_v24, %v414_v39 }
 0x19a   : > { %v412_v42 = vpop.xlane.xlu1 %411  ;;  %v406_v43 = vpop.xlane.xlu0 %405 }
 0x19b   : > { %v417_v44 = vmul.f32 0.015625, %v412_v42  ;;  %v415_v45 = vmul.f32 0.015625, %v406_v43  ;;  %v422_v46 = vmul.f32 %v804_v41, %v804_v41  ;;  %v424_v50 = vmul.f32 %v802_v40, %v802_v40 }
 0x19d   : > { %v808_v47 = vsub.f32 %v662_v31, %v417_v44  ;;  %v810_v48 = vsub.f32 %v656_v30, %v415_v45  ;;  %v426_v49 = vsel %vm400_vm0, %v422_v46, 0.0  ;;  %v432_v52 = vsel %vm400_vm0, %v424_v50, 0.0 }
 0x19e   : > { %427 = vadd.xlane.f32.xlu0 %v426_v49 }
 0x19f   : > { %v423_v51 = vmul.f32 %v810_v48, %v810_v48  ;;  %v425_v54 = vmul.f32 %v808_v47, %v808_v47 }
 0x1a1   : > { %v429_v53 = vsel %vm400_vm0, %v423_v51, 0.0  ;;  %v435_v55 = vsel %vm400_vm0, %v425_v54, 0.0 }
 0x1a2   : > { %433 = vadd.xlane.f32.xlu0 %v432_v52  ;;  %430 = vadd.xlane.f32.xlu1 %v429_v53 }
 0x1a6   : > { %436 = vadd.xlane.f32.xlu1 %v435_v55 }
 0x1b7   : > { %488 = vperm.xlu1 %689, %v482_v57  }
 0x1bb   : > { %493 = vperm.xlu1 %689, %v483_v58  }
 0x1bf   : > { %498 = vperm.xlu1 %689, %v484_v59  }
 0x22b   : > { %v428_v60 = vpop.xlane.xlu0 %427 }
 0x22c   : > { %v438_v61 = vmul.f32 0.015625, %v428_v60 }
 0x22e   : > { %v442_v62 = vadd.f32 1e-05, %v438_v61 }
 0x22f   : > { %v431_v63 = vpop.xlane.xlu1 %430  ;;  %v434_v0 = vpop.xlane.xlu0 %433 }
 0x230   : > { %712 = vrsqrt.f32 %v442_v62  ;;  %v439_v1 = vmul.f32 0.015625, %v431_v63  ;;  %v440_v2 = vmul.f32 0.015625, %v434_v0 }
 0x232   : > { %v444_v3 = vadd.f32 1e-05, %v440_v2  ;;  %v443_v4 = vadd.f32 1e-05, %v439_v1 }
 0x233   : > { %v437_v5 = vpop.xlane.xlu1 %436 }
 0x234   : > { %v441_v6 = vmul.f32 0.015625, %v437_v5  ;;  %714 = vrsqrt.f32 %v444_v3 }
 0x235   : > { %716 = vrsqrt.f32 %v443_v4 }
 0x236   : > { %v445_v7 = vadd.f32 1e-05, %v441_v6 }
 0x237   : > { %v489_v21 = vpop.permute.xlu1 %488 }
 0x238   : > { %718 = vrsqrt.f32 %v445_v7 }
 0x23a   : > { %v713_v9 = vpop.eup %712 }
 0x23b   : > { %v454_v10 = vmul.f32 %v713_v9, %v450_v8  ;;  %v494_v22 = vpop.permute.xlu1 %493 }
 0x23d   : > { %460 = vperm.xlu0 %688, %v454_v10  }
 0x23e   : > { %v715_v12 = vpop.eup %714 }
 0x23f   : > { %v456_v13 = vmul.f32 %v715_v12, %v452_v11  ;;  %v717_v14 = vpop.eup %716  ;;  %v499_v24 = vpop.permute.xlu1 %498 }
 0x240   : > { %v455_v16 = vmul.f32 %v717_v14, %v451_v15 }
 0x241   : > { %470 = vperm.xlu1 %689, %v456_v13  }
 0x242   : > { %v719_v17 = vpop.eup %718 }
 0x243   : > { %v457_v19 = vmul.f32 %v719_v17, %v453_v18 }
 0x245   : > { %465 = vperm.xlu1 %689, %v455_v16  }
 0x249   : > { %475 = vperm.xlu1 %689, %v457_v19  }
 0x24d   : > { %503 = vperm.xlu1 %689, %v485_v20  }
 0x2bc   : > { %v461_v23 = vpop.permute.xlu0 %460 }
 0x2bd   : > { %v478_v25 = vmul.f32 %v461_v23, %v804_v41 }
 0x2bf   : > { %v506_v26 = vadd.f32 %v489_v21, %v478_v25 }
 0x2c0   : > { %v471_v28 = vpop.permute.xlu1 %470 }
 0x2c1   : > { %v510_v27 = vmul.f32 0.2, %v506_v26  ;;  %v480_v29 = vmul.f32 %v471_v28, %v802_v40 }
 0x2c3   : > { %v514_v30 = vmax.f32 %v506_v26, %v510_v27  ;;  %v508_v31 = vadd.f32 %v499_v24, %v480_v29 }
 0x2c4   : > { %v466_v33 = vpop.permute.xlu1 %465 }
 0x2c5   : > { %v631_v32 = vpack.c.bf16 %v514_v30, %v514_v30  ;;  %v512_v34 = vmul.f32 0.2, %v508_v31  ;;  %v479_v35 = vmul.f32 %v466_v33, %v810_v48 }
 0x2c7   : > { %535 = vst.msk [vmem:[%s197_s24] sm:$0xf] %vm534_vm1, %v631_v32  ;;  %v516_v36 = vmax.f32 %v508_v31, %v512_v34  ;;  %v507_v37 = vadd.f32 %v494_v22, %v479_v35 }
 0x2c8   : > { %v476_v38 = vpop.permute.xlu1 %475 }
 0x2c9   : > { %v633_v39 = vpack.c.bf16 %v516_v36, %v516_v36  ;;  %v511_v41 = vmul.f32 0.2, %v507_v37  ;;  %v481_v42 = vmul.f32 %v476_v38, %v808_v47 }
 0x2cb   : > { %537 = vst.msk [vmem:[%s197_s24 + $0x8] sm:$0xf] %vm534_vm1, %v633_v39  ;;  %v515_v40 = vmax.f32 %v507_v37, %v511_v41 }
 0x2cc   : > { %v504_v43 = vpop.permute.xlu1 %503 }
 0x2cd   : > { %v632_v44 = vpack.c.bf16 %v515_v40, %v515_v40  ;;  %v509_v45 = vadd.f32 %v504_v43, %v481_v42 }
 0x2cf   : > { %536 = vst.msk [vmem:[%s197_s24 + $0x4] sm:$0xf] %vm534_vm1, %v632_v44  ;;  %v513_v46 = vmul.f32 0.2, %v509_v45 }
 0x2d1   : > { %v517_v49 = vmax.f32 %v509_v45, %v513_v46 }
 0x2d3   : > { %v634_v48 = vpack.c.bf16 %v517_v49, %v517_v49 }
 0x2d5   : > { %538 = vst.msk [vmem:[%s197_s24 + $0xc] sm:$0xf] %vm534_vm1, %v634_v48 }
 0x2d6 PF: > { %s14_s15 = sadd.s32 1, %s726_s15  }
 0x2d7   : > { %p11_p4 = scmp.ge.s32.totalorder %s14_s15, 4  }
 0x2d9   :  { %13 = sbr.rel (!%p11_p4) target bundleno = 1 (0x1), region = 66 }

// kernel: critic_forward.7
= control target key start
LH: loop header
LB: loop body
LE: loop exit
PB: predicated region body
PF: predicated region fallthrough
CT: control target
= control target key end

     0   :  { %s1339_s23 = smov 0   ;;  %s1586_s0 = inlined_call_operand.vmem [shape: bf16[2,512,16], index: 0, kind: input, shape index: {}]   ;;  %s1587_s1 = inlined_call_operand.vmem [shape: bf16[64,512], index: 1, kind: input, shape index: {}]   ;;  %s1588_s2 = inlined_call_operand.vmem [shape: f32[64,1], index: 2, kind: input, shape index: {}]   ;;  %s1589_s3 = inlined_call_operand.vmem [shape: f32[64,1], index: 3, kind: input, shape index: {}]   ;;  %s1590_s4 = inlined_call_operand.vmem [shape: f32[64,16], index: 4, kind: input, shape index: {}]   ;;  %s1591_s5 = inlined_call_operand.<no memory space> [shape: f32[1,1], index: 5, kind: input, shape index: {}]   ;;  %s1592_s6 = inlined_call_operand.vmem [shape: f32[2,1,1], index: 6, kind: output, shape index: {}]  }
   0x1   :  { %v11_v0 = vstv %s1591_s5 }
   0x2   :  { %12 = vst [vmem:[#allocation2] sm:$0x1] %v11_v0 }
   0x3 LB: > { %s1071_s24 = sadd.s32 4294967295, %s1298_s23   ;;  %p1075_p0 = scmp.ge.s32.totalorder %s1298_s23, 1  ;;  %s1298_s23 = sphi %s1339_s23, %s18_s23  }
   0x4   : > { %p214_p1 = scmp.lt.s32.totalorder %s1298_s23, 3 }
   0x6   : > { %p215_p2 = pnand %p1075_p0, %p214_p1 }
   0x7   : > { %p242_p3 = scmp.lt.s32.totalorder (!%p215_p2), %s1071_s24, 1  ;;  %v1254_v1 = vld [vmem:[%s1587_s1 + $0x4] ss:$16 sps:$4 sm:$0xff] (!%p215_p2)   ;;  %v1257_v2 = vld [vmem:[%s1587_s1 + $0xc] ss:$16 sps:$4 sm:$0xff] (!%p215_p2)   ;;  %vm733_vm0 = vcmask (!%p215_p2), 130048  }
   0x8   : > { %218 = sbr.rel (%p215_p2) target bundleno = 907 (0x38b), region = 44  ;;  %635 = vmatprep.mubr.bf16.mxu0 (!%p215_p2), %v1254_v1  ;;  %700 = vmatprep.mubr.bf16.mxu1 (!%p215_p2), %v1257_v2  ;;  %v1252_v33 = vld [vmem:[%s1587_s1] ss:$16 sps:$4 sm:$0xff] (!%p215_p2)   ;;  %v1255_v35 = vld [vmem:[%s1587_s1 + $0x8] ss:$16 sps:$4 sm:$0xff] (!%p215_p2)   ;;  %vm1022_vm1 = vcmask (!%p215_p2), 0  }
   0x9   : > { %v1258_v37 = vld [vmem:[%s1587_s1 + $0x24] ss:$16 sps:$4 sm:$0xff] (!%p215_p2)   ;;  %v1260_v38 = vld [vmem:[%s1587_s1 + $0x2c] ss:$16 sps:$4 sm:$0xff] (!%p215_p2)   ;;  %v1262_v39 = vld [vmem:[%s1587_s1 + $0x20] ss:$16 sps:$4 sm:$0xff] (!%p215_p2)  }
   0xa   : > { %v1263_v40 = vld [vmem:[%s1587_s1 + $0x28] ss:$16 sps:$4 sm:$0xff] (!%p215_p2)   ;;  %v1264_v41 = vld [vmem:[%s1587_s1 + $0x44] ss:$16 sps:$4 sm:$0xff] (!%p215_p2)   ;;  %v1266_v42 = vld [vmem:[%s1587_s1 + $0x4c] ss:$16 sps:$4 sm:$0xff] (!%p215_p2)  }
   0xb   : > { %v1268_v43 = vld [vmem:[%s1587_s1 + $0x40] ss:$16 sps:$4 sm:$0xff] (!%p215_p2)   ;;  %v1269_v44 = vld [vmem:[%s1587_s1 + $0x48] ss:$16 sps:$4 sm:$0xff] (!%p215_p2)   ;;  %v1270_v45 = vld [vmem:[%s1587_s1 + $0x64] ss:$16 sps:$4 sm:$0xff] (!%p215_p2)  }
   0xc   : > { %v1272_v46 = vld [vmem:[%s1587_s1 + $0x6c] ss:$16 sps:$4 sm:$0xff] (!%p215_p2)   ;;  %v1274_v47 = vld [vmem:[%s1587_s1 + $0x60] ss:$16 sps:$4 sm:$0xff] (!%p215_p2)   ;;  %v1275_v48 = vld [vmem:[%s1587_s1 + $0x68] ss:$16 sps:$4 sm:$0xff] (!%p215_p2)  }
   0xf   : > { %s1594_s24 = smov (!%p242_p3, %s1071_s24), 1 }
  0x10   : > { %s1128_s28 = sshll.u32 %s1594_s24, 8  ;;  %s249_s17 = scalar_lea.vmem %s1592_s6, %s1594_s24 }
  0x11   : > { %s1359_s7 = scalar_lea.vmem %s1586_s0, %s1128_s28 }
  0x12   : > { %v1220_v3 = vld [vmem:[%s1359_s7 + $0x40] sm:$0xff]   ;;  %v1224_v7 = vld [vmem:[%s1359_s7 + $0x48] sm:$0xff]   ;;  %v1228_v11 = vld [vmem:[%s1359_s7 + $0x50] sm:$0xff]  }
  0x13   : > { %v1221_v4 = vld [vmem:[%s1359_s7 + $0xc0] sm:$0xff]   ;;  %1129 = vmatprep.subr.bf16.mxu0 %v1220_v3  ;;  %v1225_v8 = vld [vmem:[%s1359_s7 + $0xc8] sm:$0xff]   ;;  %v1229_v12 = vld [vmem:[%s1359_s7 + $0xd0] sm:$0xff]  }
  0x14   : > { %v1222_v5 = vld [vmem:[%s1359_s7] sm:$0xff]   ;;  %1169 = vmatprep.subr.bf16.mxu1 %v1221_v4  ;;  %v1226_v9 = vld [vmem:[%s1359_s7 + $0x8] sm:$0xff]   ;;  %v1230_v13 = vld [vmem:[%s1359_s7 + $0x10] sm:$0xff]  }
  0x15   : > { %v1223_v6 = vld [vmem:[%s1359_s7 + $0x80] sm:$0xff]   ;;  %1130 = vmatpush3.bf16.msra.mxu0 %v1222_v5  ;;  %v1227_v10 = vld [vmem:[%s1359_s7 + $0x88] sm:$0xff]   ;;  %v1231_v14 = vld [vmem:[%s1359_s7 + $0x90] sm:$0xff]  }
  0x16   : > { %1170 = vmatpush3.bf16.msra.mxu1 %v1223_v6  ;;  %1131 = vmatprep.subr.bf16.mxu0 %v1224_v7  ;;  %v1232_v15 = vld [vmem:[%s1359_s7 + $0x58] sm:$0xff]   ;;  %v1236_v19 = vld [vmem:[%s1359_s7 + $0x60] sm:$0xff]   ;;  %v1240_v23 = vld [vmem:[%s1359_s7 + $0x68] sm:$0xff]  }
  0x17   : > { %1171 = vmatprep.subr.bf16.mxu1 %v1225_v8  ;;  %v1233_v16 = vld [vmem:[%s1359_s7 + $0xd8] sm:$0xff]   ;;  %v1237_v20 = vld [vmem:[%s1359_s7 + $0xe0] sm:$0xff]   ;;  %v1241_v24 = vld [vmem:[%s1359_s7 + $0xe8] sm:$0xff]  }
  0x18   : > { %v1234_v17 = vld [vmem:[%s1359_s7 + $0x18] sm:$0xff]   ;;  %v1238_v21 = vld [vmem:[%s1359_s7 + $0x20] sm:$0xff]   ;;  %v1242_v25 = vld [vmem:[%s1359_s7 + $0x28] sm:$0xff]  }
  0x19   : > { %1132 = vmatpush3.bf16.msra.mxu0 %v1226_v9  ;;  %v1235_v18 = vld [vmem:[%s1359_s7 + $0x98] sm:$0xff]   ;;  %v1239_v22 = vld [vmem:[%s1359_s7 + $0xa0] sm:$0xff]   ;;  %v1243_v26 = vld [vmem:[%s1359_s7 + $0xa8] sm:$0xff]  }
  0x1a   : > { %1172 = vmatpush3.bf16.msra.mxu1 %v1227_v10  ;;  %1133 = vmatprep.subr.bf16.mxu0 %v1228_v11  ;;  %v1244_v27 = vld [vmem:[%s1359_s7 + $0x70] sm:$0xff]   ;;  %v1248_v31 = vld [vmem:[%s1359_s7 + $0x78] sm:$0xff]  }
  0x1b   : > { %1173 = vmatprep.subr.bf16.mxu1 %v1229_v12  ;;  %v1245_v28 = vld [vmem:[%s1359_s7 + $0xf0] sm:$0xff]   ;;  %v1249_v32 = vld [vmem:[%s1359_s7 + $0xf8] sm:$0xff]  }
  0x1c   : > { %v1246_v29 = vld [vmem:[%s1359_s7 + $0x30] sm:$0xff]   ;;  %v1250_v34 = vld [vmem:[%s1359_s7 + $0x38] sm:$0xff]  }
  0x1d   : > { %1134 = vmatpush3.bf16.msra.mxu0 %v1230_v13  ;;  %v1247_v30 = vld [vmem:[%s1359_s7 + $0xb0] sm:$0xff]   ;;  %v1251_v36 = vld [vmem:[%s1359_s7 + $0xb8] sm:$0xff]  }
  0x1e   : > { %1174 = vmatpush3.bf16.msra.mxu1 %v1231_v14  ;;  %1135 = vmatprep.subr.bf16.mxu0 %v1232_v15 }
  0x1f   : > { %1175 = vmatprep.subr.bf16.mxu1 %v1233_v16 }
  0x21   : > { %1136 = vmatpush3.bf16.msra.mxu0 %v1234_v17 }
  0x22   : > { %1176 = vmatpush3.bf16.msra.mxu1 %v1235_v18  ;;  %1137 = vmatprep.subr.bf16.mxu0 %v1236_v19 }
  0x23   : > { %1177 = vmatprep.subr.bf16.mxu1 %v1237_v20 }
  0x25   : > { %1138 = vmatpush3.bf16.msra.mxu0 %v1238_v21 }
  0x26   : > { %1178 = vmatpush3.bf16.msra.mxu1 %v1239_v22  ;;  %1139 = vmatprep.subr.bf16.mxu0 %v1240_v23 }
  0x27   : > { %1179 = vmatprep.subr.bf16.mxu1 %v1241_v24 }
  0x29   : > { %1140 = vmatpush3.bf16.msra.mxu0 %v1242_v25 }
  0x2a   : > { %1180 = vmatpush3.bf16.msra.mxu1 %v1243_v26  ;;  %1141 = vmatprep.subr.bf16.mxu0 %v1244_v27 }
  0x2b   : > { %1181 = vmatprep.subr.bf16.mxu1 %v1245_v28 }
  0x2d   : > { %1142 = vmatpush3.bf16.msra.mxu0 %v1246_v29 }
  0x2e   : > { %1182 = vmatpush3.bf16.msra.mxu1 %v1247_v30  ;;  %1143 = vmatprep.subr.bf16.mxu0 %v1248_v31 }
  0x2f   : > { %1183 = vmatprep.subr.bf16.mxu1 %v1249_v32 }
  0x31   : > { %1144 = vmatpush3.bf16.msra.mxu0 %v1250_v34 }
  0x32   : > { %1184 = vmatpush3.bf16.msra.mxu1 %v1251_v36 }
  0x34   : > { %636 = vmatmul.mubr.bf16.vlgmr.msra.gmra.mrb[0].mxu0 %v1252_v33 }
  0x35   : > { %701 = vmatmul.mubr.bf16.vlgmr.msra.gmra.mrb[0].mxu1 %v1255_v35  ;;  %643 = vmatprep.mubr.bf16.mxu0 %v1258_v37 }
  0x36   : > { %708 = vmatprep.mubr.bf16.mxu1 %v1260_v38 }
  0x3c   : > { %644 = vmatmul.mubr.bf16.gmra.mrb[4].mxu0 %v1262_v39 }
  0x3d   : > { %709 = vmatmul.mubr.bf16.gmra.mrb[4].mxu1 %v1263_v40  ;;  %651 = vmatprep.mubr.bf16.mxu0 %v1264_v41 }
  0x3e   : > { %716 = vmatprep.mubr.bf16.mxu1 %v1266_v42 }
  0x44   : > { %652 = vmatmul.mubr.bf16.gmra.mrb[8].mxu0 %v1268_v43 }
  0x45   : > { %717 = vmatmul.mubr.bf16.gmra.mrb[8].mxu1 %v1269_v44  ;;  %659 = vmatprep.mubr.bf16.mxu0 %v1270_v45 }
  0x46   : > { %724 = vmatprep.mubr.bf16.mxu1 %v1272_v46 }
  0x4c   : > { %660 = vmatmul.mubr.bf16.gmra.mrb[12].mxu0 %v1274_v47 }
  0x4d   : > { %725 = vmatmul.mubr.bf16.gmra.mrb[12].mxu1 %v1275_v48 }
 0x107   : > { %v1145_v49 = vpop.f32.mrb[0].mxu0 }
 0x108   : > { %v1185_v50 = vpop.f32.mrb[0].mxu1  ;;  %v1146_v51 = vpop.f32.mrb[1].mxu0 }
 0x109   : > { %v1147_v52 = vadd.f32 %v1146_v51, %v1145_v49  ;;  %v1186_v53 = vpop.f32.mrb[1].mxu1  ;;  %v1148_v54 = vpop.f32.mrb[2].mxu0  ;;  %v1300_v49 = vmov 0  }
 0x10a   : > { %v1187_v55 = vadd.f32 %v1186_v53, %v1185_v50  ;;  %v1188_v56 = vpop.f32.mrb[2].mxu1  ;;  %v1149_v57 = vpop.f32.mrb[3].mxu0  ;;  %1218 = vset.pattern.permute.xlu1 %v1300_v49  ;;  %1219 = vset.pattern.permute.xlu0 %v1300_v49 }
 0x10b   : > { %v1150_v58 = vadd.f32 %v1149_v57, %v1148_v54  ;;  %v1189_v59 = vpop.f32.mrb[3].mxu1 }
 0x10c   : > { %v1190_v60 = vadd.f32 %v1189_v59, %v1188_v56  ;;  %v1435_v61 = vadd.f32 %v1187_v55, %v1147_v52 }
 0x10e   : > { %v734_v62 = vsel %vm733_vm0, %v1435_v61, 0.0  ;;  %v1439_v63 = vadd.f32 %v1190_v60, %v1150_v58 }
 0x10f   : > { %735 = vadd.xlane.f32.xlu0 %v734_v62  ;;  %v1151_v0 = vpop.f32.mrb[4].mxu0 }
 0x110   : > { %v1191_v1 = vpop.f32.mrb[4].mxu1  ;;  %v1152_v2 = vpop.f32.mrb[5].mxu0  ;;  %v737_v9 = vsel %vm733_vm0, %v1439_v63, 0.0 }
 0x111   : > { %v1153_v3 = vadd.f32 %v1152_v2, %v1151_v0  ;;  %v1192_v4 = vpop.f32.mrb[5].mxu1  ;;  %v1154_v5 = vpop.f32.mrb[6].mxu0 }
 0x112   : > { %v1193_v6 = vadd.f32 %v1192_v4, %v1191_v1  ;;  %v1194_v7 = vpop.f32.mrb[6].mxu1  ;;  %v1155_v8 = vpop.f32.mrb[7].mxu0 }
 0x113   : > { %v1156_v10 = vadd.f32 %v1155_v8, %v1154_v5  ;;  %v1195_v11 = vpop.f32.mrb[7].mxu1  ;;  %738 = vadd.xlane.f32.xlu0 %v737_v9 }
 0x114   : > { %v1196_v12 = vadd.f32 %v1195_v11, %v1194_v7  ;;  %v711_v13 = vadd.f32 %v1193_v6, %v1153_v3 }
 0x116   : > { %v740_v14 = vsel %vm733_vm0, %v711_v13, 0.0  ;;  %v714_v15 = vadd.f32 %v1196_v12, %v1156_v10 }
 0x117   : > { %741 = vadd.xlane.f32.xlu1 %v740_v14  ;;  %v1157_v16 = vpop.f32.mrb[8].mxu0 }
 0x118   : > { %v1197_v17 = vpop.f32.mrb[8].mxu1  ;;  %v1158_v18 = vpop.f32.mrb[9].mxu0  ;;  %v743_v25 = vsel %vm733_vm0, %v714_v15, 0.0 }
 0x119   : > { %v1159_v19 = vadd.f32 %v1158_v18, %v1157_v16  ;;  %v1198_v20 = vpop.f32.mrb[9].mxu1  ;;  %v1160_v21 = vpop.f32.mrb[10].mxu0 }
 0x11a   : > { %v1199_v22 = vadd.f32 %v1198_v20, %v1197_v17  ;;  %v1200_v23 = vpop.f32.mrb[10].mxu1  ;;  %v1161_v24 = vpop.f32.mrb[11].mxu0 }
 0x11b   : > { %v1162_v26 = vadd.f32 %v1161_v24, %v1160_v21  ;;  %v1201_v27 = vpop.f32.mrb[11].mxu1  ;;  %744 = vadd.xlane.f32.xlu1 %v743_v25 }
 0x11c   : > { %v1202_v28 = vadd.f32 %v1201_v27, %v1200_v23  ;;  %v719_v29 = vadd.f32 %v1199_v22, %v1159_v19  ;;  %v896_v27 = vld [vmem:[%s1589_s3 + $0x8] sm:$0xff] }
 0x11e   : > { %v746_v30 = vsel %vm733_vm0, %v719_v29, 0.0  ;;  %v722_v31 = vadd.f32 %v1202_v28, %v1162_v26  ;;  %v895_v26 = vld [vmem:[%s1589_s3] sm:$0xff]  ;;  %v897_v28 = vld [vmem:[%s1589_s3 + $0x10] sm:$0xff] }
 0x11f   : > { %747 = vadd.xlane.f32.xlu0 %v746_v30  ;;  %v1163_v32 = vpop.f32.mrb[12].mxu0  ;;  %v899_v30 = vld [vmem:[%s1589_s3 + $0x20] sm:$0xff] }
 0x120   : > { %v1203_v33 = vpop.f32.mrb[12].mxu1  ;;  %v1164_v34 = vpop.f32.mrb[13].mxu0  ;;  %v749_v35 = vsel %vm733_vm0, %v722_v31, 0.0 }
 0x121   : > { %v1165_v36 = vadd.f32 %v1164_v34, %v1163_v32  ;;  %v1204_v37 = vpop.f32.mrb[13].mxu1  ;;  %750 = vadd.xlane.f32.xlu1 %v749_v35  ;;  %v1166_v38 = vpop.f32.mrb[14].mxu0 }
 0x122   : > { %v1205_v39 = vadd.f32 %v1204_v37, %v1203_v33  ;;  %v1206_v40 = vpop.f32.mrb[14].mxu1  ;;  %v1167_v41 = vpop.f32.mrb[15].mxu0 }
 0x123   : > { %v1168_v42 = vadd.f32 %v1167_v41, %v1166_v38  ;;  %v1207_v43 = vpop.f32.mrb[15].mxu1 }
 0x124   : > { %v1208_v44 = vadd.f32 %v1207_v43, %v1206_v40  ;;  %v727_v45 = vadd.f32 %v1205_v39, %v1165_v36 }
 0x126   : > { %v752_v46 = vsel %vm733_vm0, %v727_v45, 0.0  ;;  %v730_v47 = vadd.f32 %v1208_v44, %v1168_v42  ;;  %v831_v42 = vld [vmem:[%s1588_s2] sm:$0xff] }
 0x127   : > { %753 = vadd.xlane.f32.xlu0 %v752_v46 }
 0x128   : > { %v755_v48 = vsel %vm733_vm0, %v730_v47, 0.0 }
 0x129   : > { %756 = vadd.xlane.f32.xlu1 %v755_v48  ;;  %v832_v48 = vld [vmem:[%s1588_s2 + $0x8] sm:$0xff] }
 0x19c   : > { %v736_v50 = vpop.xlane.xlu0 %735 }
 0x19d   : > { %v759_v51 = vmul.f32 0.0625, %v736_v50 }
 0x19f   : > { %v1450_v52 = vsub.f32 %v1435_v61, %v759_v51 }
 0x1a0   : > { %v739_v53 = vpop.xlane.xlu0 %738 }
 0x1a1   : > { %v760_v54 = vmul.f32 0.0625, %v739_v53  ;;  %v775_v55 = vmul.f32 %v1450_v52, %v1450_v52 }
 0x1a3   : > { %v1455_v56 = vsub.f32 %v1439_v63, %v760_v54  ;;  %v783_v57 = vsel %vm733_vm0, %v775_v55, 0.0 }
 0x1a4   : > { %v742_v58 = vpop.xlane.xlu1 %741  ;;  %784 = vadd.xlane.f32.xlu0 %v783_v57  ;;  %v833_v57 = vld [vmem:[%s1588_s2 + $0x10] sm:$0xff] }
 0x1a5   : > { %v761_v59 = vmul.f32 0.0625, %v742_v58  ;;  %v776_v60 = vmul.f32 %v1455_v56, %v1455_v56 }
 0x1a7   : > { %v1460_v62 = vsub.f32 %v711_v13, %v761_v59  ;;  %v786_v61 = vsel %vm733_vm0, %v776_v60, 0.0 }
 0x1a8   : > { %v745_v0 = vpop.xlane.xlu1 %744  ;;  %787 = vadd.xlane.f32.xlu1 %v786_v61 }
 0x1a9   : > { %v762_v1 = vmul.f32 0.0625, %v745_v0  ;;  %v777_v2 = vmul.f32 %v1460_v62, %v1460_v62  ;;  %v834_v0 = vld [vmem:[%s1588_s2 + $0x18] sm:$0xff] }
 0x1ab   : > { %v1465_v63 = vsub.f32 %v714_v15, %v762_v1  ;;  %v789_v3 = vsel %vm733_vm0, %v777_v2, 0.0 }
 0x1ac   : > { %790 = vadd.xlane.f32.xlu0 %v789_v3  ;;  %v748_v4 = vpop.xlane.xlu0 %747 }
 0x1ad   : > { %v763_v5 = vmul.f32 0.0625, %v748_v4  ;;  %v778_v6 = vmul.f32 %v1465_v63, %v1465_v63 }
 0x1ae   : > { %v751_v7 = vpop.xlane.xlu1 %750 }
 0x1af   : > { %v1470_v8 = vsub.f32 %v719_v29, %v763_v5  ;;  %v764_v9 = vmul.f32 0.0625, %v751_v7  ;;  %v792_v10 = vsel %vm733_vm0, %v778_v6, 0.0  ;;  %v898_v29 = vld [vmem:[%s1589_s3 + $0x18] sm:$0xff]  ;;  %v835_v7 = vld [vmem:[%s1588_s2 + $0x20] sm:$0xff] }
 0x1b0   : > { %793 = vadd.xlane.f32.xlu1 %v792_v10  ;;  %v836_v10 = vld [vmem:[%s1588_s2 + $0x28] sm:$0xff] }
 0x1b1   : > { %v1473_v11 = vsub.f32 %v722_v31, %v764_v9  ;;  %v779_v12 = vmul.f32 %v1470_v8, %v1470_v8 }
 0x1b3   : > { %v795_v13 = vsel %vm733_vm0, %v779_v12, 0.0  ;;  %v780_v14 = vmul.f32 %v1473_v11, %v1473_v11 }
 0x1b4   : > { %796 = vadd.xlane.f32.xlu0 %v795_v13  ;;  %v754_v15 = vpop.xlane.xlu0 %753 }
 0x1b5   : > { %v765_v16 = vmul.f32 0.0625, %v754_v15  ;;  %v798_v17 = vsel %vm733_vm0, %v780_v14, 0.0  ;;  %v900_v15 = vld [vmem:[%s1589_s3 + $0x28] sm:$0xff] }
 0x1b6   : > { %v757_v18 = vpop.xlane.xlu1 %756  ;;  %799 = vadd.xlane.f32.xlu1 %v798_v17 }
 0x1b7   : > { %v1481_v19 = vsub.f32 %v727_v45, %v765_v16  ;;  %v766_v20 = vmul.f32 0.0625, %v757_v18  ;;  %v837_v16 = vld [vmem:[%s1588_s2 + $0x30] sm:$0xff] }
 0x1b8   : > { %v901_v18 = vld [vmem:[%s1589_s3 + $0x30] sm:$0xff] }
 0x1b9   : > { %v1483_v21 = vsub.f32 %v730_v47, %v766_v20  ;;  %v781_v22 = vmul.f32 %v1481_v19, %v1481_v19 }
 0x1bb   : > { %v801_v23 = vsel %vm733_vm0, %v781_v22, 0.0  ;;  %v782_v24 = vmul.f32 %v1483_v21, %v1483_v21 }
 0x1bc   : > { %802 = vadd.xlane.f32.xlu0 %v801_v23  ;;  %v838_v23 = vld [vmem:[%s1588_s2 + $0x38] sm:$0xff] }
 0x1bd   : > { %v804_v25 = vsel %vm733_vm0, %v782_v24, 0.0 }
 0x1be   : > { %805 = vadd.xlane.f32.xlu1 %v804_v25  ;;  %v902_v25 = vld [vmem:[%s1589_s3 + $0x38] sm:$0xff] }
 0x1cf   : > { %905 = vperm.xlu1 %1218, %v895_v26  }
 0x1d3   : > { %910 = vperm.xlu1 %1218, %v896_v27  }
 0x1d7   : > { %915 = vperm.xlu1 %1218, %v897_v28  }
 0x1db   : > { %920 = vperm.xlu1 %1218, %v898_v29  }
 0x1df   : > { %925 = vperm.xlu1 %1218, %v899_v30  }
 0x231   : > { %v785_v31 = vpop.xlane.xlu0 %784 }
 0x232   : > { %v807_v32 = vmul.f32 0.0625, %v785_v31 }
 0x234   : > { %v815_v33 = vadd.f32 1e-05, %v807_v32 }
 0x235   : > { %v788_v34 = vpop.xlane.xlu1 %787 }
 0x236   : > { %1276 = vrsqrt.f32 %v815_v33  ;;  %v808_v35 = vmul.f32 0.0625, %v788_v34 }
 0x238   : > { %v816_v36 = vadd.f32 1e-05, %v808_v35 }
 0x239   : > { %v791_v37 = vpop.xlane.xlu0 %790 }
 0x23a   : > { %1278 = vrsqrt.f32 %v816_v36  ;;  %v809_v38 = vmul.f32 0.0625, %v791_v37  ;;  %v967_v37 = vld [vmem:[%s1590_s4] sm:$0xff] }
 0x23c   : > { %v817_v39 = vadd.f32 1e-05, %v809_v38 }
 0x23d   : > { %v794_v40 = vpop.xlane.xlu1 %793 }
 0x23e   : > { %1280 = vrsqrt.f32 %v817_v39  ;;  %v810_v41 = vmul.f32 0.0625, %v794_v40 }
 0x240   : > { %v1277_v43 = vpop.eup %1276  ;;  %v818_v44 = vadd.f32 1e-05, %v810_v41 }
 0x241   : > { %v797_v45 = vpop.xlane.xlu0 %796  ;;  %v839_v46 = vmul.f32 %v1277_v43, %v831_v42 }
 0x242   : > { %1282 = vrsqrt.f32 %v818_v44  ;;  %v811_v47 = vmul.f32 0.0625, %v797_v45 }
 0x243   : > { %v800_v49 = vpop.xlane.xlu1 %799  ;;  %849 = vperm.xlu0 %1219, %v839_v46  }
 0x244   : > { %v1279_v50 = vpop.eup %1278  ;;  %v819_v51 = vadd.f32 1e-05, %v811_v47  ;;  %v812_v53 = vmul.f32 0.0625, %v800_v49 }
 0x245   : > { %v840_v54 = vmul.f32 %v1279_v50, %v832_v48  ;;  %v969_v50 = vld [vmem:[%s1590_s4 + $0x10] sm:$0xff] }
 0x246   : > { %1284 = vrsqrt.f32 %v819_v51  ;;  %v820_v55 = vadd.f32 1e-05, %v812_v53 }
 0x247   : > { %854 = vperm.xlu1 %1218, %v840_v54  }
 0x248   : > { %v1281_v58 = vpop.eup %1280  ;;  %1286 = vrsqrt.f32 %v820_v55 }
 0x249   : > { %v803_v59 = vpop.xlane.xlu0 %802  ;;  %v841_v60 = vmul.f32 %v1281_v58, %v833_v57 }
 0x24a   : > { %v813_v61 = vmul.f32 0.0625, %v803_v59 }
 0x24b   : > { %v806_v1 = vpop.xlane.xlu1 %805  ;;  %859 = vperm.xlu1 %1218, %v841_v60  }
 0x24c   : > { %v1283_v2 = vpop.eup %1282  ;;  %v821_v3 = vadd.f32 1e-05, %v813_v61  ;;  %v814_v4 = vmul.f32 0.0625, %v806_v1 }
 0x24d   : > { %v842_v5 = vmul.f32 %v1283_v2, %v834_v0 }
 0x24e   : > { %1288 = vrsqrt.f32 %v821_v3  ;;  %v822_v6 = vadd.f32 1e-05, %v814_v4 }
 0x24f   : > { %864 = vperm.xlu1 %1218, %v842_v5   ;;  %v906_v26 = vpop.permute.xlu1 %905 }
 0x250   : > { %v1285_v9 = vpop.eup %1284  ;;  %1290 = vrsqrt.f32 %v822_v6 }
 0x251   : > { %v843_v12 = vmul.f32 %v1285_v9, %v835_v7 }
 0x252   : > { %v1287_v13 = vpop.eup %1286 }
 0x253   : > { %869 = vperm.xlu1 %1218, %v843_v12   ;;  %v844_v14 = vmul.f32 %v1287_v13, %v836_v10  ;;  %v911_v27 = vpop.permute.xlu1 %910 }
 0x255   : > { %874 = vperm.xlu0 %1219, %v844_v14  }
 0x257   : > { %930 = vperm.xlu1 %1218, %v900_v15   ;;  %v916_v28 = vpop.permute.xlu1 %915 }
 0x258   : > { %v1289_v17 = vpop.eup %1288 }
 0x259   : > { %v845_v20 = vmul.f32 %v1289_v17, %v837_v16 }
 0x25a   : > { %v1291_v22 = vpop.eup %1290 }
 0x25b   : > { %935 = vperm.xlu1 %1218, %v901_v18   ;;  %879 = vperm.xlu0 %1219, %v845_v20   ;;  %v846_v24 = vmul.f32 %v1291_v22, %v838_v23  ;;  %v921_v29 = vpop.permute.xlu1 %920 }
 0x25f   : > { %884 = vperm.xlu0 %1219, %v846_v24   ;;  %v926_v30 = vpop.permute.xlu1 %925  ;;  %v973_v24 = vld [vmem:[%s1590_s4 + $0x30] sm:$0xff] }
 0x263   : > { %940 = vperm.xlu0 %1219, %v902_v25  }
 0x2c2   : > { %v850_v31 = vpop.permute.xlu0 %849 }
 0x2c3   : > { %v887_v32 = vmul.f32 %v850_v31, %v1450_v52  ;;  %v968_v52 = vld [vmem:[%s1590_s4 + $0x8] sm:$0xff]  ;;  %v974_v31 = vld [vmem:[%s1590_s4 + $0x38] sm:$0xff] }
 0x2c5   : > { %v943_v33 = vadd.f32 %v906_v26, %v887_v32 }
 0x2c6   : > { %v855_v34 = vpop.permute.xlu1 %854 }
 0x2c7   : > { %v951_v35 = vmul.f32 0.2, %v943_v33  ;;  %v888_v36 = vmul.f32 %v855_v34, %v1455_v56 }
 0x2c9   : > { %v944_v38 = vadd.f32 %v911_v27, %v888_v36  ;;  %v959_v39 = vmax.f32 %v943_v33, %v951_v35 }
 0x2ca   : > { %v860_v40 = vpop.permute.xlu1 %859 }
 0x2cb   : > { %v952_v41 = vmul.f32 0.2, %v944_v38  ;;  %v889_v42 = vmul.f32 %v860_v40, %v1460_v62  ;;  %v975_v43 = vmul.f32 %v967_v37, %v959_v39 }
 0x2cd   : > { %v945_v44 = vadd.f32 %v916_v28, %v889_v42  ;;  %v983_v45 = vsel %vm733_vm0, %v975_v43, 0.0  ;;  %v960_v46 = vmax.f32 %v944_v38, %v952_v41 }
 0x2ce   : > { %v865_v56 = vpop.permute.xlu1 %864  ;;  %984 = vadd.xlane.f32.xlu1 %v983_v45 }
 0x2cf   : > { %v953_v47 = vmul.f32 0.2, %v945_v44  ;;  %v890_v48 = vmul.f32 %v865_v56, %v1465_v63  ;;  %v976_v49 = vmul.f32 %v968_v52, %v960_v46  ;;  %v970_v63 = vld [vmem:[%s1590_s4 + $0x18] sm:$0xff] }
 0x2d1   : > { %v946_v62 = vadd.f32 %v921_v29, %v890_v48  ;;  %v986_v51 = vsel %vm733_vm0, %v976_v49, 0.0  ;;  %v961_v53 = vmax.f32 %v945_v44, %v953_v47 }
 0x2d2   : > { %v870_v54 = vpop.permute.xlu1 %869  ;;  %987 = vadd.xlane.f32.xlu0 %v986_v51  ;;  %v1020_v51 = vld [vmem:[#allocation2] sm:$0x1] }
 0x2d3   : > { %v954_v55 = vmul.f32 0.2, %v946_v62  ;;  %v891_v57 = vmul.f32 %v870_v54, %v1470_v8  ;;  %v977_v58 = vmul.f32 %v969_v50, %v961_v53  ;;  %v971_v8 = vld [vmem:[%s1590_s4 + $0x20] sm:$0xff] }
 0x2d4   : > { %v875_v59 = vpop.permute.xlu0 %874 }
 0x2d5   : > { %v947_v60 = vadd.f32 %v926_v30, %v891_v57  ;;  %v892_v61 = vmul.f32 %v875_v59, %v1473_v11  ;;  %v989_v0 = vsel %vm733_vm0, %v977_v58, 0.0  ;;  %v962_v1 = vmax.f32 %v946_v62, %v954_v55  ;;  %v972_v11 = vld [vmem:[%s1590_s4 + $0x28] sm:$0xff] }
 0x2d6   : > { %v931_v2 = vpop.permute.xlu1 %930  ;;  %990 = vadd.xlane.f32.xlu0 %v989_v0 }
 0x2d7   : > { %v955_v3 = vmul.f32 0.2, %v947_v60  ;;  %v948_v4 = vadd.f32 %v931_v2, %v892_v61  ;;  %v978_v5 = vmul.f32 %v970_v63, %v962_v1 }
 0x2d9   : > { %v956_v6 = vmul.f32 0.2, %v948_v4  ;;  %v992_v7 = vsel %vm733_vm0, %v978_v5, 0.0  ;;  %v963_v9 = vmax.f32 %v947_v60, %v955_v3 }
 0x2da   : > { %993 = vadd.xlane.f32.xlu1 %v992_v7  ;;  %v880_v10 = vpop.permute.xlu0 %879  ;;  %v936_v15 = vpop.permute.xlu1 %935 }
 0x2db   : > { %v964_v12 = vmax.f32 %v948_v4, %v956_v6  ;;  %v893_v13 = vmul.f32 %v880_v10, %v1481_v19  ;;  %v979_v14 = vmul.f32 %v971_v8, %v963_v9 }
 0x2dd   : > { %v949_v16 = vadd.f32 %v936_v15, %v893_v13  ;;  %v995_v17 = vsel %vm733_vm0, %v979_v14, 0.0  ;;  %v980_v18 = vmul.f32 %v972_v11, %v964_v12 }
 0x2de   : > { %996 = vadd.xlane.f32.xlu0 %v995_v17  ;;  %v885_v20 = vpop.permute.xlu0 %884 }
 0x2df   : > { %v957_v22 = vmul.f32 0.2, %v949_v16  ;;  %v998_v23 = vsel %vm733_vm0, %v980_v18, 0.0  ;;  %v894_v25 = vmul.f32 %v885_v20, %v1483_v21 }
 0x2e0   : > { %999 = vadd.xlane.f32.xlu1 %v998_v23 }
 0x2e1   : > { %v965_v26 = vmax.f32 %v949_v16, %v957_v22 }
 0x2e2   : > { %v941_v19 = vpop.permute.xlu0 %940 }
 0x2e3   : > { %v950_v27 = vadd.f32 %v941_v19, %v894_v25  ;;  %v981_v28 = vmul.f32 %v973_v24, %v965_v26 }
 0x2e5   : > { %v958_v29 = vmul.f32 0.2, %v950_v27  ;;  %v1001_v30 = vsel %vm733_vm0, %v981_v28, 0.0 }
 0x2e6   : > { %1002 = vadd.xlane.f32.xlu0 %v1001_v30 }
 0x2e7   : > { %v966_v32 = vmax.f32 %v950_v27, %v958_v29 }
 0x2e9   : > { %v982_v33 = vmul.f32 %v974_v31, %v966_v32 }
 0x2eb   : > { %v1004_v34 = vsel %vm733_vm0, %v982_v33, 0.0 }
 0x2ec   : > { %1005 = vadd.xlane.f32.xlu1 %v1004_v34 }
 0x35b   : > { %v985_v36 = vpop.xlane.xlu1 %984 }
 0x35f   : > { %v988_v35 = vpop.xlane.xlu0 %987 }
 0x360   : > { %v1007_v37 = vadd.f32 %v988_v35, %v985_v36 }
 0x363   : > { %v991_v21 = vpop.xlane.xlu0 %990 }
 0x364   : > { %v1008_v39 = vadd.f32 %v1007_v37, %v991_v21 }
 0x367   : > { %v994_v38 = vpop.xlane.xlu1 %993 }
 0x368   : > { %v1009_v41 = vadd.f32 %v1008_v39, %v994_v38 }
 0x36b   : > { %v997_v40 = vpop.xlane.xlu0 %996 }
 0x36c   : > { %v1010_v42 = vadd.f32 %v1009_v41, %v997_v40 }
 0x36d   : > { %v1000_v43 = vpop.xlane.xlu1 %999 }
 0x36e   : > { %v1011_v44 = vadd.f32 %v1010_v42, %v1000_v43 }
 0x373   : > { %v1003_v52 = vpop.xlane.xlu0 %1002 }
 0x374   : > { %v1012_v45 = vadd.f32 %v1011_v44, %v1003_v52 }
 0x379   : > { %v1006_v46 = vpop.xlane.xlu1 %1005 }
 0x37a   : > { %v1013_v56 = vadd.f32 %v1012_v45, %v1006_v46 }
 0x37c   : > { %v1014_v47 = vrot.slane %v1013_v56, 4 }
 0x37e   : > { %v1015_v48 = vadd.f32 %v1014_v47, %v1013_v56 }
 0x380   : > { %v1016_v49 = vrot.slane %v1015_v48, 2 }
 0x382   : > { %v1017_v50 = vadd.f32 %v1016_v49, %v1015_v48 }
 0x384   : > { %v1018_v62 = vrot.slane %v1017_v50, 1 }
 0x386   : > { %v1019_v53 = vadd.f32 %v1018_v62, %v1017_v50 }
 0x388   : > { %v1021_v54 = vadd.f32 %v1020_v51, %v1019_v53 }
 0x38a   : > { %1023 = vst.msk [vmem:[%s249_s17] sm:$0x1] %vm1022_vm1, %v1021_v54 }
 0x38b PF: > { %s18_s23 = sadd.s32 1, %s1298_s23  }
 0x38c   : > { %p15_p4 = scmp.ge.s32.totalorder %s18_s23, 4  }
 0x38e   :  { %17 = sbr.rel (!%p15_p4) target bundleno = 3 (0x3), region = 74 }

</bundles_post_ra>
